<compile_context>
chip_gen: v6e
topology: v6e:2x2x1
jax: 0.10.0
libtpu: 0.0.40
codegen_flags: <defaults>
</compile_context>

<pallas_src>
import functools

import jax
import jax.numpy as jnp
from jax.experimental import pallas as pl
from jax.experimental.pallas import tpu as pltpu

_LANE = 128
_SUBLANE = 8


def _round_up(x, m):
    return (x + m - 1) // m * m


def _sigmoid(z):
    # sigmoid(z) == 0.5 * (tanh(z/2) + 1): a single EUP op per element.
    return 0.5 * (jnp.tanh(0.5 * z) + 1.0)


def _lstm_recurrence_kernel(xw_ref, whh_ref, out_ref, cn_ref, h_scr, c_scr,
                            *, seq_len, time_padded):
    """One grid step = (one batch block) x (one time chunk).

    xw_ref : (T_CHUNK, B_BLK, 4*Hp) f32  precomputed x@W_ih^T + bias (gate preacts)
    whh_ref: (Hp, 4*Hp)                  recurrent weights W_hh^T (VMEM-resident)
    out_ref: (T_CHUNK, B_BLK, Hp)   f32  hidden states for this chunk (time-major)
    cn_ref : (B_BLK, Hp)            f32  final cell state (resident per batch block)
    h_scr, c_scr : (B_BLK, Hp) f32 VMEM  recurrent carry across time chunks
    """
    tc = pl.program_id(1)
    n_tc = pl.num_programs(1)
    t_chunk = xw_ref.shape[0]
    hp = h_scr.shape[-1]

    @pl.when(tc == 0)
    def _():
        h_scr[...] = jnp.zeros_like(h_scr)
        c_scr[...] = jnp.zeros_like(c_scr)

    whh = whh_ref[...]          # (Hp, 4*Hp), resident in VMEM
    h = h_scr[...]
    c = c_scr[...]

    # Statically unrolled recurrence over the chunk: all ref indices are static,
    # gate slices land on 128-lane boundaries (vreg aligned).
    for tt in range(t_chunk):
        gates = xw_ref[tt] + jnp.dot(h.astype(whh.dtype), whh,
                                     preferred_element_type=jnp.float32)
        i_g = _sigmoid(gates[:, 0 * hp:1 * hp])
        f_g = _sigmoid(gates[:, 1 * hp:2 * hp])
        g_g = jnp.tanh(gates[:, 2 * hp:3 * hp])
        o_g = _sigmoid(gates[:, 3 * hp:4 * hp])
        c_new = f_g * c + i_g * g_g
        h_new = o_g * jnp.tanh(c_new)
        if time_padded:
            # Freeze the state on zero-padded timesteps so cn stays exact.
            valid = (tc * t_chunk + tt) < seq_len
            h_new = jnp.where(valid, h_new, h)
            c_new = jnp.where(valid, c_new, c)
        out_ref[tt] = h_new
        h, c = h_new, c_new

    h_scr[...] = h
    c_scr[...] = c

    @pl.when(tc == n_tc - 1)
    def _():
        cn_ref[...] = c


def lstm_forward(x, w_ih, w_hh, b_ih, b_hh, *,
                 param_dtype=jnp.float32, t_chunk=16):
    """Single-layer batch_first LSTM forward (torch.nn.LSTM semantics, zero init state).

    x: (B, T, D_in); w_ih: (4H, D_in); w_hh: (4H, H); b_ih/b_hh: (4H,)  [gates i,f,g,o]
    Returns (output (B, T, H), (hn (1, B, H), cn (1, B, H))).
    """
    # TODO(synk): the module's optional (h0, c0) initial-state path is not wired up;
    # the default call (h0=c0=None -> zero initial state) is what is implemented.
    B, T, D_in = x.shape
    H = w_hh.shape[1]
    f32 = jnp.float32

    Hp = _round_up(max(H, 1), _LANE)           # lane-dense hidden size
    Bp = _round_up(max(B, 1), _SUBLANE)        # sublane-aligned batch
    B_BLK = Bp if Bp <= 256 else 256           # batch block (parallel grid axis)
    Bp = _round_up(Bp, B_BLK)
    T_CHUNK = max(1, min(t_chunk, T))
    Tp = _round_up(T, T_CHUNK)

    def scatter_gates(w):
        """Pad each of the 4 gate blocks along the last axis from H to Hp (zeros)."""
        pads = [(0, 0)] * (w.ndim - 1) + [(0, Hp - H)]
        return jnp.concatenate(
            [jnp.pad(w[..., k * H:(k + 1) * H], pads) for k in range(4)], axis=-1)

    w_ih_t = scatter_gates(jnp.transpose(w_ih).astype(f32))           # (D_in, 4*Hp)
    w_hh_t = scatter_gates(jnp.transpose(w_hh).astype(f32))           # (H,   4*Hp)
    w_hh_t = jnp.pad(w_hh_t, ((0, Hp - H), (0, 0)))                   # (Hp,  4*Hp)
    bias = scatter_gates((b_ih + b_hh).astype(f32))                   # (4*Hp,)

    x_p = jnp.pad(x.astype(f32), ((0, Bp - B), (0, Tp - T), (0, 0)))  # (Bp, Tp, D_in)

    # Hoisted input projection: one big parallel matmul over all timesteps, emitted
    # directly in the time-major layout the recurrent kernel consumes.
    xw = jnp.einsum('btd,dg->tbg',
                    x_p.astype(param_dtype), w_ih_t.astype(param_dtype),
                    preferred_element_type=f32) + bias[None, None, :]  # (Tp, Bp, 4*Hp) f32

    kernel = functools.partial(_lstm_recurrence_kernel,
                               seq_len=T, time_padded=(Tp != T))

    out_tm, cn = pl.pallas_call(
        kernel,
        out_shape=(
            jax.ShapeDtypeStruct((Tp, Bp, Hp), f32),   # h sequence, time-major
            jax.ShapeDtypeStruct((Bp, Hp), f32),       # final cell state
        ),
        grid_spec=pltpu.PrefetchScalarGridSpec(
            num_scalar_prefetch=0,
            grid=(Bp // B_BLK, Tp // T_CHUNK),
            in_specs=[
                pl.BlockSpec((T_CHUNK, B_BLK, 4 * Hp), lambda b, t: (t, b, 0)),  # XW chunk
                pl.BlockSpec((Hp, 4 * Hp), lambda b, t: (0, 0)),                 # W_hh^T (resident)
            ],
            out_specs=(
                pl.BlockSpec((T_CHUNK, B_BLK, Hp), lambda b, t: (t, b, 0)),      # h chunk
                pl.BlockSpec((B_BLK, Hp), lambda b, t: (b, 0)),                  # final c (resident)
            ),
            scratch_shapes=[
                pltpu.VMEM((B_BLK, Hp), f32),   # h carry across time chunks
                pltpu.VMEM((B_BLK, Hp), f32),   # c carry across time chunks
            ],
        ),
        compiler_params=pltpu.CompilerParams(
            dimension_semantics=("parallel", "arbitrary")),  # batch parallel, time serial
    )(xw, w_hh_t.astype(param_dtype))

    output = jnp.transpose(out_tm, (1, 0, 2))[:B, :T, :H]   # (B, T, H) batch_first
    hn = output[:, T - 1, :].reshape(1, B, H)               # hn is the last hidden state
    cn = cn[:B, :H].reshape(1, B, H)
    return output, (hn, cn)


def _lstm_reference(x, w_ih, w_hh, b_ih, b_hh):
    """Pure-JAX reference matching torch.nn.LSTM forward semantics (zero init state)."""
    B, T, _ = x.shape
    H = w_hh.shape[1]
    h = jnp.zeros((B, H), jnp.float32)
    c = jnp.zeros((B, H), jnp.float32)
    outs = []
    for t in range(T):
        gates = x[:, t, :] @ w_ih.T + h @ w_hh.T + b_ih + b_hh
        i = jax.nn.sigmoid(gates[:, 0 * H:1 * H])
        f = jax.nn.sigmoid(gates[:, 1 * H:2 * H])
        g = jnp.tanh(gates[:, 2 * H:3 * H])
        o = jax.nn.sigmoid(gates[:, 3 * H:4 * H])
        c = f * c + i * g
        h = o * jnp.tanh(c)
        outs.append(h)
    return jnp.stack(outs, axis=1), h.reshape(1, B, H), c.reshape(1, B, H)


if __name__ == "__main__":
    # Module constants: input_size=2, hidden_size=2, num_layers=1, batch_size=1
    input_size, hidden_size, batch_size, seq_len = 2, 2, 1, 8

    key = jax.random.PRNGKey(0)
    kx, k1, k2, k3, k4 = jax.random.split(key, 5)

    # Deterministic parameter init (uniform +-1/sqrt(H), like PyTorch's default).
    bound = 1.0 / jnp.sqrt(jnp.float32(hidden_size))
    w_ih = jax.random.uniform(k1, (4 * hidden_size, input_size), jnp.float32, -bound, bound)
    w_hh = jax.random.uniform(k2, (4 * hidden_size, hidden_size), jnp.float32, -bound, bound)
    b_ih = jax.random.uniform(k3, (4 * hidden_size,), jnp.float32, -bound, bound)
    b_hh = jax.random.uniform(k4, (4 * hidden_size,), jnp.float32, -bound, bound)

    x = jax.random.normal(kx, (batch_size, seq_len, input_size), jnp.float32)

    # f32 path: tight check against the pure-JAX reference.
    output, (hn, cn) = lstm_forward(x, w_ih, w_hh, b_ih, b_hh)
    jax.block_until_ready((output, hn, cn))

    ref_out, ref_hn, ref_cn = _lstm_reference(x, w_ih, w_hh, b_ih, b_hh)
    assert output.shape == (batch_size, seq_len, hidden_size)
    assert hn.shape == (1, batch_size, hidden_size)
    assert cn.shape == (1, batch_size, hidden_size)
    assert jnp.allclose(output, ref_out, atol=1e-5, rtol=1e-5)
    assert jnp.allclose(hn, ref_hn, atol=1e-5, rtol=1e-5)
    assert jnp.allclose(cn, ref_cn, atol=1e-5, rtol=1e-5)

    # bf16-weight path (f32 accumulation / gate math): loose check against the f32 result.
    output_bf, (hn_bf, cn_bf) = lstm_forward(x, w_ih, w_hh, b_ih, b_hh,
                                             param_dtype=jnp.bfloat16)
    jax.block_until_ready((output_bf, hn_bf, cn_bf))
    assert jnp.allclose(output_bf, output, atol=5e-2, rtol=5e-2)
    assert jnp.allclose(cn_bf, cn, atol=5e-2, rtol=5e-2)

    print("KERNEL_OK")
</pallas_src>

<mosaic_0001>
module attributes {stable_mosaic.version = 11 : i64} {
  func.func @_lstm_recurrence_kernel(%arg0: i32, %arg1: i32, %arg2: memref<8x8x512xf32, #tpu.memory_space<vmem>>, %arg3: memref<128x512xf32, #tpu.memory_space<vmem>>, %arg4: memref<8x8x128xf32, #tpu.memory_space<vmem>>, %arg5: memref<8x128xf32, #tpu.memory_space<vmem>>, %arg6: memref<8x128xf32, #tpu.memory_space<vmem>>, %arg7: memref<8x128xf32, #tpu.memory_space<vmem>>) attributes {dimension_semantics = [#tpu.dimension_semantics<parallel>, #tpu.dimension_semantics<arbitrary>], iteration_bounds = array<i64: 1, 1>, scalar_prefetch = 0 : i64, scratch_operands = 2 : i64, tpu.core_type = #tpu.core_type<tc>, window_params = [{transform_indices = @transform_0, window_bounds = array<i64: 8, 8, 512>}, {pipeline_mode = #tpu.pipeline_mode<synchronous>, transform_indices = @transform_1, window_bounds = array<i64: 128, 512>}, {transform_indices = @transform_2, window_bounds = array<i64: 8, 8, 128>}, {transform_indices = @transform_3, window_bounds = array<i64: 8, 128>}]} {
    %c0_i32 = arith.constant 0 : i32
    %0 = arith.cmpi eq, %arg1, %c0_i32 : i32
    %1 = arith.extui %0 : i1 to i32
    %c0_i32_0 = arith.constant 0 : i32
    %2 = arith.cmpi ne, %1, %c0_i32_0 : i32
    scf.if %2 {
      %cst_132 = arith.constant 0.000000e+00 : f32
      %315 = vector.broadcast %cst_132 : f32 to vector<8x128xf32>
      %c0_133 = arith.constant 0 : index
      %c0_134 = arith.constant 0 : index
      %316 = vector.load %arg6[%c0_133, %c0_134] : memref<8x128xf32, #tpu.memory_space<vmem>>, vector<8x128xf32>
      tpu.vector_store %arg6[%c0_133, %c0_134], %315 {strides = array<i32>} : memref<8x128xf32, #tpu.memory_space<vmem>>, vector<8x128xf32>,
      %cst_135 = arith.constant 0.000000e+00 : f32
      %317 = vector.broadcast %cst_135 : f32 to vector<8x128xf32>
      %c0_136 = arith.constant 0 : index
      %c0_137 = arith.constant 0 : index
      %318 = vector.load %arg7[%c0_136, %c0_137] : memref<8x128xf32, #tpu.memory_space<vmem>>, vector<8x128xf32>
      tpu.vector_store %arg7[%c0_136, %c0_137], %317 {strides = array<i32>} : memref<8x128xf32, #tpu.memory_space<vmem>>, vector<8x128xf32>,
    } else {
    }
    %c0 = arith.constant 0 : index
    %c0_1 = arith.constant 0 : index
    %3 = vector.load %arg3[%c0, %c0_1] : memref<128x512xf32, #tpu.memory_space<vmem>>, vector<128x512xf32>
    %c0_2 = arith.constant 0 : index
    %c0_3 = arith.constant 0 : index
    %4 = vector.load %arg6[%c0_2, %c0_3] : memref<8x128xf32, #tpu.memory_space<vmem>>, vector<8x128xf32>
    %c0_4 = arith.constant 0 : index
    %c0_5 = arith.constant 0 : index
    %5 = vector.load %arg7[%c0_4, %c0_5] : memref<8x128xf32, #tpu.memory_space<vmem>>, vector<8x128xf32>
    %c0_6 = arith.constant 0 : index
    %c0_7 = arith.constant 0 : index
    %c0_8 = arith.constant 0 : index
    %6 = vector.load %arg2[%c0_6, %c0_7, %c0_8] : memref<8x8x512xf32, #tpu.memory_space<vmem>>, vector<1x8x512xf32>
    %7 = vector.shape_cast %6 : vector<1x8x512xf32> to vector<8x512xf32>
    %cst = arith.constant dense<0.000000e+00> : vector<8x512xf32>
    %8 = tpu.matmul %4, %3, %cst {dimension_numbers = #tpu.dot_dimension_numbers<[1], [0], [0], [1], [0, 0, 1, 1], [], []>} : vector<8x128xf32>, vector<128x512xf32>, vector<8x512xf32> -> vector<8x512xf32>
    %9 = arith.addf %7, %8 : vector<8x512xf32>
    %10 = vector.extract_strided_slice %9 {offsets = [0, 0], sizes = [8, 128], strides = [1, 1]} : vector<8x512xf32> to vector<8x128xf32>
    %cst_9 = arith.constant 5.000000e-01 : f32
    %11 = vector.broadcast %cst_9 : f32 to vector<8x128xf32>
    %12 = arith.mulf %11, %10 : vector<8x128xf32>
    %13 = math.tanh %12 : vector<8x128xf32>
    %cst_10 = arith.constant 1.000000e+00 : f32
    %14 = vector.broadcast %cst_10 : f32 to vector<8x128xf32>
    %15 = arith.addf %13, %14 : vector<8x128xf32>
    %cst_11 = arith.constant 5.000000e-01 : f32
    %16 = vector.broadcast %cst_11 : f32 to vector<8x128xf32>
    %17 = arith.mulf %16, %15 : vector<8x128xf32>
    %18 = vector.extract_strided_slice %9 {offsets = [0, 128], sizes = [8, 128], strides = [1, 1]} : vector<8x512xf32> to vector<8x128xf32>
    %cst_12 = arith.constant 5.000000e-01 : f32
    %19 = vector.broadcast %cst_12 : f32 to vector<8x128xf32>
    %20 = arith.mulf %19, %18 : vector<8x128xf32>
    %21 = math.tanh %20 : vector<8x128xf32>
    %cst_13 = arith.constant 1.000000e+00 : f32
    %22 = vector.broadcast %cst_13 : f32 to vector<8x128xf32>
    %23 = arith.addf %21, %22 : vector<8x128xf32>
    %cst_14 = arith.constant 5.000000e-01 : f32
    %24 = vector.broadcast %cst_14 : f32 to vector<8x128xf32>
    %25 = arith.mulf %24, %23 : vector<8x128xf32>
    %26 = vector.extract_strided_slice %9 {offsets = [0, 256], sizes = [8, 128], strides = [1, 1]} : vector<8x512xf32> to vector<8x128xf32>
    %27 = math.tanh %26 : vector<8x128xf32>
    %28 = vector.extract_strided_slice %9 {offsets = [0, 384], sizes = [8, 128], strides = [1, 1]} : vector<8x512xf32> to vector<8x128xf32>
    %cst_15 = arith.constant 5.000000e-01 : f32
    %29 = vector.broadcast %cst_15 : f32 to vector<8x128xf32>
    %30 = arith.mulf %29, %28 : vector<8x128xf32>
    %31 = math.tanh %30 : vector<8x128xf32>
    %cst_16 = arith.constant 1.000000e+00 : f32
    %32 = vector.broadcast %cst_16 : f32 to vector<8x128xf32>
    %33 = arith.addf %31, %32 : vector<8x128xf32>
    %cst_17 = arith.constant 5.000000e-01 : f32
    %34 = vector.broadcast %cst_17 : f32 to vector<8x128xf32>
    %35 = arith.mulf %34, %33 : vector<8x128xf32>
    %36 = arith.mulf %25, %5 : vector<8x128xf32>
    %37 = arith.mulf %17, %27 : vector<8x128xf32>
    %38 = arith.addf %36, %37 : vector<8x128xf32>
    %39 = math.tanh %38 : vector<8x128xf32>
    %40 = arith.mulf %35, %39 : vector<8x128xf32>
    %c0_18 = arith.constant 0 : index
    %c0_19 = arith.constant 0 : index
    %c0_20 = arith.constant 0 : index
    %41 = vector.load %arg4[%c0_18, %c0_19, %c0_20] : memref<8x8x128xf32, #tpu.memory_space<vmem>>, vector<1x8x128xf32>
    %42 = vector.shape_cast %41 : vector<1x8x128xf32> to vector<8x128xf32>
    %43 = vector.shape_cast %40 : vector<8x128xf32> to vector<1x8x128xf32>
    tpu.vector_store %arg4[%c0_18, %c0_19, %c0_20], %43 {strides = array<i32>} : memref<8x8x128xf32, #tpu.memory_space<vmem>>, vector<1x8x128xf32>,
    %c1 = arith.constant 1 : index
    %c0_21 = arith.constant 0 : index
    %c0_22 = arith.constant 0 : index
    %44 = vector.load %arg2[%c1, %c0_21, %c0_22] : memref<8x8x512xf32, #tpu.memory_space<vmem>>, vector<1x8x512xf32>
    %45 = vector.shape_cast %44 : vector<1x8x512xf32> to vector<8x512xf32>
    %cst_23 = arith.constant dense<0.000000e+00> : vector<8x512xf32>
    %46 = tpu.matmul %40, %3, %cst_23 {dimension_numbers = #tpu.dot_dimension_numbers<[1], [0], [0], [1], [0, 0, 1, 1], [], []>} : vector<8x128xf32>, vector<128x512xf32>, vector<8x512xf32> -> vector<8x512xf32>
    %47 = arith.addf %45, %46 : vector<8x512xf32>
    %48 = vector.extract_strided_slice %47 {offsets = [0, 0], sizes = [8, 128], strides = [1, 1]} : vector<8x512xf32> to vector<8x128xf32>
    %cst_24 = arith.constant 5.000000e-01 : f32
    %49 = vector.broadcast %cst_24 : f32 to vector<8x128xf32>
    %50 = arith.mulf %49, %48 : vector<8x128xf32>
    %51 = math.tanh %50 : vector<8x128xf32>
    %cst_25 = arith.constant 1.000000e+00 : f32
    %52 = vector.broadcast %cst_25 : f32 to vector<8x128xf32>
    %53 = arith.addf %51, %52 : vector<8x128xf32>
    %cst_26 = arith.constant 5.000000e-01 : f32
    %54 = vector.broadcast %cst_26 : f32 to vector<8x128xf32>
    %55 = arith.mulf %54, %53 : vector<8x128xf32>
    %56 = vector.extract_strided_slice %47 {offsets = [0, 128], sizes = [8, 128], strides = [1, 1]} : vector<8x512xf32> to vector<8x128xf32>
    %cst_27 = arith.constant 5.000000e-01 : f32
    %57 = vector.broadcast %cst_27 : f32 to vector<8x128xf32>
    %58 = arith.mulf %57, %56 : vector<8x128xf32>
    %59 = math.tanh %58 : vector<8x128xf32>
    %cst_28 = arith.constant 1.000000e+00 : f32
    %60 = vector.broadcast %cst_28 : f32 to vector<8x128xf32>
    %61 = arith.addf %59, %60 : vector<8x128xf32>
    %cst_29 = arith.constant 5.000000e-01 : f32
    %62 = vector.broadcast %cst_29 : f32 to vector<8x128xf32>
    %63 = arith.mulf %62, %61 : vector<8x128xf32>
    %64 = vector.extract_strided_slice %47 {offsets = [0, 256], sizes = [8, 128], strides = [1, 1]} : vector<8x512xf32> to vector<8x128xf32>
    %65 = math.tanh %64 : vector<8x128xf32>
    %66 = vector.extract_strided_slice %47 {offsets = [0, 384], sizes = [8, 128], strides = [1, 1]} : vector<8x512xf32> to vector<8x128xf32>
    %cst_30 = arith.constant 5.000000e-01 : f32
    %67 = vector.broadcast %cst_30 : f32 to vector<8x128xf32>
    %68 = arith.mulf %67, %66 : vector<8x128xf32>
    %69 = math.tanh %68 : vector<8x128xf32>
    %cst_31 = arith.constant 1.000000e+00 : f32
    %70 = vector.broadcast %cst_31 : f32 to vector<8x128xf32>
    %71 = arith.addf %69, %70 : vector<8x128xf32>
    %cst_32 = arith.constant 5.000000e-01 : f32
    %72 = vector.broadcast %cst_32 : f32 to vector<8x128xf32>
    %73 = arith.mulf %72, %71 : vector<8x128xf32>
    %74 = arith.mulf %63, %38 : vector<8x128xf32>
    %75 = arith.mulf %55, %65 : vector<8x128xf32>
    %76 = arith.addf %74, %75 : vector<8x128xf32>
    %77 = math.tanh %76 : vector<8x128xf32>
    %78 = arith.mulf %73, %77 : vector<8x128xf32>
    %c1_33 = arith.constant 1 : index
    %c0_34 = arith.constant 0 : index
    %c0_35 = arith.constant 0 : index
    %79 = vector.load %arg4[%c1_33, %c0_34, %c0_35] : memref<8x8x128xf32, #tpu.memory_space<vmem>>, vector<1x8x128xf32>
    %80 = vector.shape_cast %79 : vector<1x8x128xf32> to vector<8x128xf32>
    %81 = vector.shape_cast %78 : vector<8x128xf32> to vector<1x8x128xf32>
    tpu.vector_store %arg4[%c1_33, %c0_34, %c0_35], %81 {strides = array<i32>} : memref<8x8x128xf32, #tpu.memory_space<vmem>>, vector<1x8x128xf32>,
    %c2 = arith.constant 2 : index
    %c0_36 = arith.constant 0 : index
    %c0_37 = arith.constant 0 : index
    %82 = vector.load %arg2[%c2, %c0_36, %c0_37] : memref<8x8x512xf32, #tpu.memory_space<vmem>>, vector<1x8x512xf32>
    %83 = vector.shape_cast %82 : vector<1x8x512xf32> to vector<8x512xf32>
    %cst_38 = arith.constant dense<0.000000e+00> : vector<8x512xf32>
    %84 = tpu.matmul %78, %3, %cst_38 {dimension_numbers = #tpu.dot_dimension_numbers<[1], [0], [0], [1], [0, 0, 1, 1], [], []>} : vector<8x128xf32>, vector<128x512xf32>, vector<8x512xf32> -> vector<8x512xf32>
    %85 = arith.addf %83, %84 : vector<8x512xf32>
    %86 = vector.extract_strided_slice %85 {offsets = [0, 0], sizes = [8, 128], strides = [1, 1]} : vector<8x512xf32> to vector<8x128xf32>
    %cst_39 = arith.constant 5.000000e-01 : f32
    %87 = vector.broadcast %cst_39 : f32 to vector<8x128xf32>
    %88 = arith.mulf %87, %86 : vector<8x128xf32>
    %89 = math.tanh %88 : vector<8x128xf32>
    %cst_40 = arith.constant 1.000000e+00 : f32
    %90 = vector.broadcast %cst_40 : f32 to vector<8x128xf32>
    %91 = arith.addf %89, %90 : vector<8x128xf32>
    %cst_41 = arith.constant 5.000000e-01 : f32
    %92 = vector.broadcast %cst_41 : f32 to vector<8x128xf32>
    %93 = arith.mulf %92, %91 : vector<8x128xf32>
    %94 = vector.extract_strided_slice %85 {offsets = [0, 128], sizes = [8, 128], strides = [1, 1]} : vector<8x512xf32> to vector<8x128xf32>
    %cst_42 = arith.constant 5.000000e-01 : f32
    %95 = vector.broadcast %cst_42 : f32 to vector<8x128xf32>
    %96 = arith.mulf %95, %94 : vector<8x128xf32>
    %97 = math.tanh %96 : vector<8x128xf32>
    %cst_43 = arith.constant 1.000000e+00 : f32
    %98 = vector.broadcast %cst_43 : f32 to vector<8x128xf32>
    %99 = arith.addf %97, %98 : vector<8x128xf32>
    %cst_44 = arith.constant 5.000000e-01 : f32
    %100 = vector.broadcast %cst_44 : f32 to vector<8x128xf32>
    %101 = arith.mulf %100, %99 : vector<8x128xf32>
    %102 = vector.extract_strided_slice %85 {offsets = [0, 256], sizes = [8, 128], strides = [1, 1]} : vector<8x512xf32> to vector<8x128xf32>
    %103 = math.tanh %102 : vector<8x128xf32>
    %104 = vector.extract_strided_slice %85 {offsets = [0, 384], sizes = [8, 128], strides = [1, 1]} : vector<8x512xf32> to vector<8x128xf32>
    %cst_45 = arith.constant 5.000000e-01 : f32
    %105 = vector.broadcast %cst_45 : f32 to vector<8x128xf32>
    %106 = arith.mulf %105, %104 : vector<8x128xf32>
    %107 = math.tanh %106 : vector<8x128xf32>
    %cst_46 = arith.constant 1.000000e+00 : f32
    %108 = vector.broadcast %cst_46 : f32 to vector<8x128xf32>
    %109 = arith.addf %107, %108 : vector<8x128xf32>
    %cst_47 = arith.constant 5.000000e-01 : f32
    %110 = vector.broadcast %cst_47 : f32 to vector<8x128xf32>
    %111 = arith.mulf %110, %109 : vector<8x128xf32>
    %112 = arith.mulf %101, %76 : vector<8x128xf32>
    %113 = arith.mulf %93, %103 : vector<8x128xf32>
    %114 = arith.addf %112, %113 : vector<8x128xf32>
    %115 = math.tanh %114 : vector<8x128xf32>
    %116 = arith.mulf %111, %115 : vector<8x128xf32>
    %c2_48 = arith.constant 2 : index
    %c0_49 = arith.constant 0 : index
    %c0_50 = arith.constant 0 : index
    %117 = vector.load %arg4[%c2_48, %c0_49, %c0_50] : memref<8x8x128xf32, #tpu.memory_space<vmem>>, vector<1x8x128xf32>
    %118 = vector.shape_cast %117 : vector<1x8x128xf32> to vector<8x128xf32>
    %119 = vector.shape_cast %116 : vector<8x128xf32> to vector<1x8x128xf32>
    tpu.vector_store %arg4[%c2_48, %c0_49, %c0_50], %119 {strides = array<i32>} : memref<8x8x128xf32, #tpu.memory_space<vmem>>, vector<1x8x128xf32>,
    %c3 = arith.constant 3 : index
    %c0_51 = arith.constant 0 : index
    %c0_52 = arith.constant 0 : index
    %120 = vector.load %arg2[%c3, %c0_51, %c0_52] : memref<8x8x512xf32, #tpu.memory_space<vmem>>, vector<1x8x512xf32>
    %121 = vector.shape_cast %120 : vector<1x8x512xf32> to vector<8x512xf32>
    %cst_53 = arith.constant dense<0.000000e+00> : vector<8x512xf32>
    %122 = tpu.matmul %116, %3, %cst_53 {dimension_numbers = #tpu.dot_dimension_numbers<[1], [0], [0], [1], [0, 0, 1, 1], [], []>} : vector<8x128xf32>, vector<128x512xf32>, vector<8x512xf32> -> vector<8x512xf32>
    %123 = arith.addf %121, %122 : vector<8x512xf32>
    %124 = vector.extract_strided_slice %123 {offsets = [0, 0], sizes = [8, 128], strides = [1, 1]} : vector<8x512xf32> to vector<8x128xf32>
    %cst_54 = arith.constant 5.000000e-01 : f32
    %125 = vector.broadcast %cst_54 : f32 to vector<8x128xf32>
    %126 = arith.mulf %125, %124 : vector<8x128xf32>
    %127 = math.tanh %126 : vector<8x128xf32>
    %cst_55 = arith.constant 1.000000e+00 : f32
    %128 = vector.broadcast %cst_55 : f32 to vector<8x128xf32>
    %129 = arith.addf %127, %128 : vector<8x128xf32>
    %cst_56 = arith.constant 5.000000e-01 : f32
    %130 = vector.broadcast %cst_56 : f32 to vector<8x128xf32>
    %131 = arith.mulf %130, %129 : vector<8x128xf32>
    %132 = vector.extract_strided_slice %123 {offsets = [0, 128], sizes = [8, 128], strides = [1, 1]} : vector<8x512xf32> to vector<8x128xf32>
    %cst_57 = arith.constant 5.000000e-01 : f32
    %133 = vector.broadcast %cst_57 : f32 to vector<8x128xf32>
    %134 = arith.mulf %133, %132 : vector<8x128xf32>
    %135 = math.tanh %134 : vector<8x128xf32>
    %cst_58 = arith.constant 1.000000e+00 : f32
    %136 = vector.broadcast %cst_58 : f32 to vector<8x128xf32>
    %137 = arith.addf %135, %136 : vector<8x128xf32>
    %cst_59 = arith.constant 5.000000e-01 : f32
    %138 = vector.broadcast %cst_59 : f32 to vector<8x128xf32>
    %139 = arith.mulf %138, %137 : vector<8x128xf32>
    %140 = vector.extract_strided_slice %123 {offsets = [0, 256], sizes = [8, 128], strides = [1, 1]} : vector<8x512xf32> to vector<8x128xf32>
    %141 = math.tanh %140 : vector<8x128xf32>
    %142 = vector.extract_strided_slice %123 {offsets = [0, 384], sizes = [8, 128], strides = [1, 1]} : vector<8x512xf32> to vector<8x128xf32>
    %cst_60 = arith.constant 5.000000e-01 : f32
    %143 = vector.broadcast %cst_60 : f32 to vector<8x128xf32>
    %144 = arith.mulf %143, %142 : vector<8x128xf32>
    %145 = math.tanh %144 : vector<8x128xf32>
    %cst_61 = arith.constant 1.000000e+00 : f32
    %146 = vector.broadcast %cst_61 : f32 to vector<8x128xf32>
    %147 = arith.addf %145, %146 : vector<8x128xf32>
    %cst_62 = arith.constant 5.000000e-01 : f32
    %148 = vector.broadcast %cst_62 : f32 to vector<8x128xf32>
    %149 = arith.mulf %148, %147 : vector<8x128xf32>
    %150 = arith.mulf %139, %114 : vector<8x128xf32>
    %151 = arith.mulf %131, %141 : vector<8x128xf32>
    %152 = arith.addf %150, %151 : vector<8x128xf32>
    %153 = math.tanh %152 : vector<8x128xf32>
    %154 = arith.mulf %149, %153 : vector<8x128xf32>
    %c3_63 = arith.constant 3 : index
    %c0_64 = arith.constant 0 : index
    %c0_65 = arith.constant 0 : index
    %155 = vector.load %arg4[%c3_63, %c0_64, %c0_65] : memref<8x8x128xf32, #tpu.memory_space<vmem>>, vector<1x8x128xf32>
    %156 = vector.shape_cast %155 : vector<1x8x128xf32> to vector<8x128xf32>
    %157 = vector.shape_cast %154 : vector<8x128xf32> to vector<1x8x128xf32>
    tpu.vector_store %arg4[%c3_63, %c0_64, %c0_65], %157 {strides = array<i32>} : memref<8x8x128xf32, #tpu.memory_space<vmem>>, vector<1x8x128xf32>,
    %c4 = arith.constant 4 : index
    %c0_66 = arith.constant 0 : index
    %c0_67 = arith.constant 0 : index
    %158 = vector.load %arg2[%c4, %c0_66, %c0_67] : memref<8x8x512xf32, #tpu.memory_space<vmem>>, vector<1x8x512xf32>
    %159 = vector.shape_cast %158 : vector<1x8x512xf32> to vector<8x512xf32>
    %cst_68 = arith.constant dense<0.000000e+00> : vector<8x512xf32>
    %160 = tpu.matmul %154, %3, %cst_68 {dimension_numbers = #tpu.dot_dimension_numbers<[1], [0], [0], [1], [0, 0, 1, 1], [], []>} : vector<8x128xf32>, vector<128x512xf32>, vector<8x512xf32> -> vector<8x512xf32>
    %161 = arith.addf %159, %160 : vector<8x512xf32>
    %162 = vector.extract_strided_slice %161 {offsets = [0, 0], sizes = [8, 128], strides = [1, 1]} : vector<8x512xf32> to vector<8x128xf32>
    %cst_69 = arith.constant 5.000000e-01 : f32
    %163 = vector.broadcast %cst_69 : f32 to vector<8x128xf32>
    %164 = arith.mulf %163, %162 : vector<8x128xf32>
    %165 = math.tanh %164 : vector<8x128xf32>
    %cst_70 = arith.constant 1.000000e+00 : f32
    %166 = vector.broadcast %cst_70 : f32 to vector<8x128xf32>
    %167 = arith.addf %165, %166 : vector<8x128xf32>
    %cst_71 = arith.constant 5.000000e-01 : f32
    %168 = vector.broadcast %cst_71 : f32 to vector<8x128xf32>
    %169 = arith.mulf %168, %167 : vector<8x128xf32>
    %170 = vector.extract_strided_slice %161 {offsets = [0, 128], sizes = [8, 128], strides = [1, 1]} : vector<8x512xf32> to vector<8x128xf32>
    %cst_72 = arith.constant 5.000000e-01 : f32
    %171 = vector.broadcast %cst_72 : f32 to vector<8x128xf32>
    %172 = arith.mulf %171, %170 : vector<8x128xf32>
    %173 = math.tanh %172 : vector<8x128xf32>
    %cst_73 = arith.constant 1.000000e+00 : f32
    %174 = vector.broadcast %cst_73 : f32 to vector<8x128xf32>
    %175 = arith.addf %173, %174 : vector<8x128xf32>
    %cst_74 = arith.constant 5.000000e-01 : f32
    %176 = vector.broadcast %cst_74 : f32 to vector<8x128xf32>
    %177 = arith.mulf %176, %175 : vector<8x128xf32>
    %178 = vector.extract_strided_slice %161 {offsets = [0, 256], sizes = [8, 128], strides = [1, 1]} : vector<8x512xf32> to vector<8x128xf32>
    %179 = math.tanh %178 : vector<8x128xf32>
    %180 = vector.extract_strided_slice %161 {offsets = [0, 384], sizes = [8, 128], strides = [1, 1]} : vector<8x512xf32> to vector<8x128xf32>
    %cst_75 = arith.constant 5.000000e-01 : f32
    %181 = vector.broadcast %cst_75 : f32 to vector<8x128xf32>
    %182 = arith.mulf %181, %180 : vector<8x128xf32>
    %183 = math.tanh %182 : vector<8x128xf32>
    %cst_76 = arith.constant 1.000000e+00 : f32
    %184 = vector.broadcast %cst_76 : f32 to vector<8x128xf32>
    %185 = arith.addf %183, %184 : vector<8x128xf32>
    %cst_77 = arith.constant 5.000000e-01 : f32
    %186 = vector.broadcast %cst_77 : f32 to vector<8x128xf32>
    %187 = arith.mulf %186, %185 : vector<8x128xf32>
    %188 = arith.mulf %177, %152 : vector<8x128xf32>
    %189 = arith.mulf %169, %179 : vector<8x128xf32>
    %190 = arith.addf %188, %189 : vector<8x128xf32>
    %191 = math.tanh %190 : vector<8x128xf32>
    %192 = arith.mulf %187, %191 : vector<8x128xf32>
    %c4_78 = arith.constant 4 : index
    %c0_79 = arith.constant 0 : index
    %c0_80 = arith.constant 0 : index
    %193 = vector.load %arg4[%c4_78, %c0_79, %c0_80] : memref<8x8x128xf32, #tpu.memory_space<vmem>>, vector<1x8x128xf32>
    %194 = vector.shape_cast %193 : vector<1x8x128xf32> to vector<8x128xf32>
    %195 = vector.shape_cast %192 : vector<8x128xf32> to vector<1x8x128xf32>
    tpu.vector_store %arg4[%c4_78, %c0_79, %c0_80], %195 {strides = array<i32>} : memref<8x8x128xf32, #tpu.memory_space<vmem>>, vector<1x8x128xf32>,
    %c5 = arith.constant 5 : index
    %c0_81 = arith.constant 0 : index
    %c0_82 = arith.constant 0 : index
    %196 = vector.load %arg2[%c5, %c0_81, %c0_82] : memref<8x8x512xf32, #tpu.memory_space<vmem>>, vector<1x8x512xf32>
    %197 = vector.shape_cast %196 : vector<1x8x512xf32> to vector<8x512xf32>
    %cst_83 = arith.constant dense<0.000000e+00> : vector<8x512xf32>
    %198 = tpu.matmul %192, %3, %cst_83 {dimension_numbers = #tpu.dot_dimension_numbers<[1], [0], [0], [1], [0, 0, 1, 1], [], []>} : vector<8x128xf32>, vector<128x512xf32>, vector<8x512xf32> -> vector<8x512xf32>
    %199 = arith.addf %197, %198 : vector<8x512xf32>
    %200 = vector.extract_strided_slice %199 {offsets = [0, 0], sizes = [8, 128], strides = [1, 1]} : vector<8x512xf32> to vector<8x128xf32>
    %cst_84 = arith.constant 5.000000e-01 : f32
    %201 = vector.broadcast %cst_84 : f32 to vector<8x128xf32>
    %202 = arith.mulf %201, %200 : vector<8x128xf32>
    %203 = math.tanh %202 : vector<8x128xf32>
    %cst_85 = arith.constant 1.000000e+00 : f32
    %204 = vector.broadcast %cst_85 : f32 to vector<8x128xf32>
    %205 = arith.addf %203, %204 : vector<8x128xf32>
    %cst_86 = arith.constant 5.000000e-01 : f32
    %206 = vector.broadcast %cst_86 : f32 to vector<8x128xf32>
    %207 = arith.mulf %206, %205 : vector<8x128xf32>
    %208 = vector.extract_strided_slice %199 {offsets = [0, 128], sizes = [8, 128], strides = [1, 1]} : vector<8x512xf32> to vector<8x128xf32>
    %cst_87 = arith.constant 5.000000e-01 : f32
    %209 = vector.broadcast %cst_87 : f32 to vector<8x128xf32>
    %210 = arith.mulf %209, %208 : vector<8x128xf32>
    %211 = math.tanh %210 : vector<8x128xf32>
    %cst_88 = arith.constant 1.000000e+00 : f32
    %212 = vector.broadcast %cst_88 : f32 to vector<8x128xf32>
    %213 = arith.addf %211, %212 : vector<8x128xf32>
    %cst_89 = arith.constant 5.000000e-01 : f32
    %214 = vector.broadcast %cst_89 : f32 to vector<8x128xf32>
    %215 = arith.mulf %214, %213 : vector<8x128xf32>
    %216 = vector.extract_strided_slice %199 {offsets = [0, 256], sizes = [8, 128], strides = [1, 1]} : vector<8x512xf32> to vector<8x128xf32>
    %217 = math.tanh %216 : vector<8x128xf32>
    %218 = vector.extract_strided_slice %199 {offsets = [0, 384], sizes = [8, 128], strides = [1, 1]} : vector<8x512xf32> to vector<8x128xf32>
    %cst_90 = arith.constant 5.000000e-01 : f32
    %219 = vector.broadcast %cst_90 : f32 to vector<8x128xf32>
    %220 = arith.mulf %219, %218 : vector<8x128xf32>
    %221 = math.tanh %220 : vector<8x128xf32>
    %cst_91 = arith.constant 1.000000e+00 : f32
    %222 = vector.broadcast %cst_91 : f32 to vector<8x128xf32>
    %223 = arith.addf %221, %222 : vector<8x128xf32>
    %cst_92 = arith.constant 5.000000e-01 : f32
    %224 = vector.broadcast %cst_92 : f32 to vector<8x128xf32>
    %225 = arith.mulf %224, %223 : vector<8x128xf32>
    %226 = arith.mulf %215, %190 : vector<8x128xf32>
    %227 = arith.mulf %207, %217 : vector<8x128xf32>
    %228 = arith.addf %226, %227 : vector<8x128xf32>
    %229 = math.tanh %228 : vector<8x128xf32>
    %230 = arith.mulf %225, %229 : vector<8x128xf32>
    %c5_93 = arith.constant 5 : index
    %c0_94 = arith.constant 0 : index
    %c0_95 = arith.constant 0 : index
    %231 = vector.load %arg4[%c5_93, %c0_94, %c0_95] : memref<8x8x128xf32, #tpu.memory_space<vmem>>, vector<1x8x128xf32>
    %232 = vector.shape_cast %231 : vector<1x8x128xf32> to vector<8x128xf32>
    %233 = vector.shape_cast %230 : vector<8x128xf32> to vector<1x8x128xf32>
    tpu.vector_store %arg4[%c5_93, %c0_94, %c0_95], %233 {strides = array<i32>} : memref<8x8x128xf32, #tpu.memory_space<vmem>>, vector<1x8x128xf32>,
    %c6 = arith.constant 6 : index
    %c0_96 = arith.constant 0 : index
    %c0_97 = arith.constant 0 : index
    %234 = vector.load %arg2[%c6, %c0_96, %c0_97] : memref<8x8x512xf32, #tpu.memory_space<vmem>>, vector<1x8x512xf32>
    %235 = vector.shape_cast %234 : vector<1x8x512xf32> to vector<8x512xf32>
    %cst_98 = arith.constant dense<0.000000e+00> : vector<8x512xf32>
    %236 = tpu.matmul %230, %3, %cst_98 {dimension_numbers = #tpu.dot_dimension_numbers<[1], [0], [0], [1], [0, 0, 1, 1], [], []>} : vector<8x128xf32>, vector<128x512xf32>, vector<8x512xf32> -> vector<8x512xf32>
    %237 = arith.addf %235, %236 : vector<8x512xf32>
    %238 = vector.extract_strided_slice %237 {offsets = [0, 0], sizes = [8, 128], strides = [1, 1]} : vector<8x512xf32> to vector<8x128xf32>
    %cst_99 = arith.constant 5.000000e-01 : f32
    %239 = vector.broadcast %cst_99 : f32 to vector<8x128xf32>
    %240 = arith.mulf %239, %238 : vector<8x128xf32>
    %241 = math.tanh %240 : vector<8x128xf32>
    %cst_100 = arith.constant 1.000000e+00 : f32
    %242 = vector.broadcast %cst_100 : f32 to vector<8x128xf32>
    %243 = arith.addf %241, %242 : vector<8x128xf32>
    %cst_101 = arith.constant 5.000000e-01 : f32
    %244 = vector.broadcast %cst_101 : f32 to vector<8x128xf32>
    %245 = arith.mulf %244, %243 : vector<8x128xf32>
    %246 = vector.extract_strided_slice %237 {offsets = [0, 128], sizes = [8, 128], strides = [1, 1]} : vector<8x512xf32> to vector<8x128xf32>
    %cst_102 = arith.constant 5.000000e-01 : f32
    %247 = vector.broadcast %cst_102 : f32 to vector<8x128xf32>
    %248 = arith.mulf %247, %246 : vector<8x128xf32>
    %249 = math.tanh %248 : vector<8x128xf32>
    %cst_103 = arith.constant 1.000000e+00 : f32
    %250 = vector.broadcast %cst_103 : f32 to vector<8x128xf32>
    %251 = arith.addf %249, %250 : vector<8x128xf32>
    %cst_104 = arith.constant 5.000000e-01 : f32
    %252 = vector.broadcast %cst_104 : f32 to vector<8x128xf32>
    %253 = arith.mulf %252, %251 : vector<8x128xf32>
    %254 = vector.extract_strided_slice %237 {offsets = [0, 256], sizes = [8, 128], strides = [1, 1]} : vector<8x512xf32> to vector<8x128xf32>
    %255 = math.tanh %254 : vector<8x128xf32>
    %256 = vector.extract_strided_slice %237 {offsets = [0, 384], sizes = [8, 128], strides = [1, 1]} : vector<8x512xf32> to vector<8x128xf32>
    %cst_105 = arith.constant 5.000000e-01 : f32
    %257 = vector.broadcast %cst_105 : f32 to vector<8x128xf32>
    %258 = arith.mulf %257, %256 : vector<8x128xf32>
    %259 = math.tanh %258 : vector<8x128xf32>
    %cst_106 = arith.constant 1.000000e+00 : f32
    %260 = vector.broadcast %cst_106 : f32 to vector<8x128xf32>
    %261 = arith.addf %259, %260 : vector<8x128xf32>
    %cst_107 = arith.constant 5.000000e-01 : f32
    %262 = vector.broadcast %cst_107 : f32 to vector<8x128xf32>
    %263 = arith.mulf %262, %261 : vector<8x128xf32>
    %264 = arith.mulf %253, %228 : vector<8x128xf32>
    %265 = arith.mulf %245, %255 : vector<8x128xf32>
    %266 = arith.addf %264, %265 : vector<8x128xf32>
    %267 = math.tanh %266 : vector<8x128xf32>
    %268 = arith.mulf %263, %267 : vector<8x128xf32>
    %c6_108 = arith.constant 6 : index
    %c0_109 = arith.constant 0 : index
    %c0_110 = arith.constant 0 : index
    %269 = vector.load %arg4[%c6_108, %c0_109, %c0_110] : memref<8x8x128xf32, #tpu.memory_space<vmem>>, vector<1x8x128xf32>
    %270 = vector.shape_cast %269 : vector<1x8x128xf32> to vector<8x128xf32>
    %271 = vector.shape_cast %268 : vector<8x128xf32> to vector<1x8x128xf32>
    tpu.vector_store %arg4[%c6_108, %c0_109, %c0_110], %271 {strides = array<i32>} : memref<8x8x128xf32, #tpu.memory_space<vmem>>, vector<1x8x128xf32>,
    %c7 = arith.constant 7 : index
    %c0_111 = arith.constant 0 : index
    %c0_112 = arith.constant 0 : index
    %272 = vector.load %arg2[%c7, %c0_111, %c0_112] : memref<8x8x512xf32, #tpu.memory_space<vmem>>, vector<1x8x512xf32>
    %273 = vector.shape_cast %272 : vector<1x8x512xf32> to vector<8x512xf32>
    %cst_113 = arith.constant dense<0.000000e+00> : vector<8x512xf32>
    %274 = tpu.matmul %268, %3, %cst_113 {dimension_numbers = #tpu.dot_dimension_numbers<[1], [0], [0], [1], [0, 0, 1, 1], [], []>} : vector<8x128xf32>, vector<128x512xf32>, vector<8x512xf32> -> vector<8x512xf32>
    %275 = arith.addf %273, %274 : vector<8x512xf32>
    %276 = vector.extract_strided_slice %275 {offsets = [0, 0], sizes = [8, 128], strides = [1, 1]} : vector<8x512xf32> to vector<8x128xf32>
    %cst_114 = arith.constant 5.000000e-01 : f32
    %277 = vector.broadcast %cst_114 : f32 to vector<8x128xf32>
    %278 = arith.mulf %277, %276 : vector<8x128xf32>
    %279 = math.tanh %278 : vector<8x128xf32>
    %cst_115 = arith.constant 1.000000e+00 : f32
    %280 = vector.broadcast %cst_115 : f32 to vector<8x128xf32>
    %281 = arith.addf %279, %280 : vector<8x128xf32>
    %cst_116 = arith.constant 5.000000e-01 : f32
    %282 = vector.broadcast %cst_116 : f32 to vector<8x128xf32>
    %283 = arith.mulf %282, %281 : vector<8x128xf32>
    %284 = vector.extract_strided_slice %275 {offsets = [0, 128], sizes = [8, 128], strides = [1, 1]} : vector<8x512xf32> to vector<8x128xf32>
    %cst_117 = arith.constant 5.000000e-01 : f32
    %285 = vector.broadcast %cst_117 : f32 to vector<8x128xf32>
    %286 = arith.mulf %285, %284 : vector<8x128xf32>
    %287 = math.tanh %286 : vector<8x128xf32>
    %cst_118 = arith.constant 1.000000e+00 : f32
    %288 = vector.broadcast %cst_118 : f32 to vector<8x128xf32>
    %289 = arith.addf %287, %288 : vector<8x128xf32>
    %cst_119 = arith.constant 5.000000e-01 : f32
    %290 = vector.broadcast %cst_119 : f32 to vector<8x128xf32>
    %291 = arith.mulf %290, %289 : vector<8x128xf32>
    %292 = vector.extract_strided_slice %275 {offsets = [0, 256], sizes = [8, 128], strides = [1, 1]} : vector<8x512xf32> to vector<8x128xf32>
    %293 = math.tanh %292 : vector<8x128xf32>
    %294 = vector.extract_strided_slice %275 {offsets = [0, 384], sizes = [8, 128], strides = [1, 1]} : vector<8x512xf32> to vector<8x128xf32>
    %cst_120 = arith.constant 5.000000e-01 : f32
    %295 = vector.broadcast %cst_120 : f32 to vector<8x128xf32>
    %296 = arith.mulf %295, %294 : vector<8x128xf32>
    %297 = math.tanh %296 : vector<8x128xf32>
    %cst_121 = arith.constant 1.000000e+00 : f32
    %298 = vector.broadcast %cst_121 : f32 to vector<8x128xf32>
    %299 = arith.addf %297, %298 : vector<8x128xf32>
    %cst_122 = arith.constant 5.000000e-01 : f32
    %300 = vector.broadcast %cst_122 : f32 to vector<8x128xf32>
    %301 = arith.mulf %300, %299 : vector<8x128xf32>
    %302 = arith.mulf %291, %266 : vector<8x128xf32>
    %303 = arith.mulf %283, %293 : vector<8x128xf32>
    %304 = arith.addf %302, %303 : vector<8x128xf32>
    %305 = math.tanh %304 : vector<8x128xf32>
    %306 = arith.mulf %301, %305 : vector<8x128xf32>
    %c7_123 = arith.constant 7 : index
    %c0_124 = arith.constant 0 : index
    %c0_125 = arith.constant 0 : index
    %307 = vector.load %arg4[%c7_123, %c0_124, %c0_125] : memref<8x8x128xf32, #tpu.memory_space<vmem>>, vector<1x8x128xf32>
    %308 = vector.shape_cast %307 : vector<1x8x128xf32> to vector<8x128xf32>
    %309 = vector.shape_cast %306 : vector<8x128xf32> to vector<1x8x128xf32>
    tpu.vector_store %arg4[%c7_123, %c0_124, %c0_125], %309 {strides = array<i32>} : memref<8x8x128xf32, #tpu.memory_space<vmem>>, vector<1x8x128xf32>,
    %c0_126 = arith.constant 0 : index
    %c0_127 = arith.constant 0 : index
    %310 = vector.load %arg6[%c0_126, %c0_127] : memref<8x128xf32, #tpu.memory_space<vmem>>, vector<8x128xf32>
    tpu.vector_store %arg6[%c0_126, %c0_127], %306 {strides = array<i32>} : memref<8x128xf32, #tpu.memory_space<vmem>>, vector<8x128xf32>,
    %c0_128 = arith.constant 0 : index
    %c0_129 = arith.constant 0 : index
    %311 = vector.load %arg7[%c0_128, %c0_129] : memref<8x128xf32, #tpu.memory_space<vmem>>, vector<8x128xf32>
    tpu.vector_store %arg7[%c0_128, %c0_129], %304 {strides = array<i32>} : memref<8x128xf32, #tpu.memory_space<vmem>>, vector<8x128xf32>,
    %c0_i32_130 = arith.constant 0 : i32
    %312 = arith.cmpi eq, %arg1, %c0_i32_130 : i32
    %313 = arith.extui %312 : i1 to i32
    %c0_i32_131 = arith.constant 0 : i32
    %314 = arith.cmpi ne, %313, %c0_i32_131 : i32
    scf.if %314 {
      %c0_132 = arith.constant 0 : index
      %c0_133 = arith.constant 0 : index
      %315 = vector.load %arg5[%c0_132, %c0_133] : memref<8x128xf32, #tpu.memory_space<vmem>>, vector<8x128xf32>
      tpu.vector_store %arg5[%c0_132, %c0_133], %304 {strides = array<i32>} : memref<8x128xf32, #tpu.memory_space<vmem>>, vector<8x128xf32>,
    } else {
    }
    return
  }
  func.func @transform_0(%arg0: i32, %arg1: i32) -> (i32, i32, i32) {
    %c0_i32 = arith.constant 0 : i32
    %c0_i32_0 = arith.constant 0 : i32
    return %arg1, %arg0, %c0_i32 : i32, i32, i32
  }
  func.func @transform_1(%arg0: i32, %arg1: i32) -> (i32, i32) {
    %c0_i32 = arith.constant 0 : i32
    %c0_i32_0 = arith.constant 0 : i32
    %c0_i32_1 = arith.constant 0 : i32
    return %c0_i32, %c0_i32_0 : i32, i32
  }
  func.func @transform_2(%arg0: i32, %arg1: i32) -> (i32, i32, i32) {
    %c0_i32 = arith.constant 0 : i32
    %c0_i32_0 = arith.constant 0 : i32
    return %arg1, %arg0, %c0_i32 : i32, i32, i32
  }
  func.func @transform_3(%arg0: i32, %arg1: i32) -> (i32, i32) {
    %c0_i32 = arith.constant 0 : i32
    %c0_i32_0 = arith.constant 0 : i32
    return %arg0, %c0_i32 : i32, i32
  }
}

</mosaic_0001>

<bundles_post_ra>
// kernel: tpu_custom_call.1
= control target key start
LH: loop header
LB: loop body
LE: loop exit
PB: predicated region body
PF: predicated region fallthrough
CT: control target
= control target key end

     0   :  { %9 = vsyncpa [#allocation5], 0  ;;  %s2611_s0 = inlined_call_operand.hbm [shape: f32[8,8,512], index: 0, kind: input, shape index: {}]   ;;  %s2612_s1 = inlined_call_operand.hbm [shape: f32[128,512], index: 1, kind: input, shape index: {}]   ;;  %s2613_s2 = inlined_call_operand.hbm [shape: f32[8,8,128], index: 2, kind: output, shape index: {0}]   ;;  %s2614_s3 = inlined_call_operand.hbm [shape: f32[8,128], index: 3, kind: output, shape index: {1}]  }
   0x1   :  { %10 = vsyncpa [#allocation8], 0 }
   0x2   :  { %11 = vsyncpa [#allocation6], 0 }
   0x3   :  { %12 = vsyncpa [#allocation11], 0  ;;  %s1760_s12 = smov [#allocation4]  }
   0x4   :  { %s18_s13 = sshll.u32 %s1760_s12, 4  ;;  %s19_s13 = int_to_ptr.vmem [resolvable:$true] %s18_s13 }
   0x5   :  { %s1680_s14 = scalar_lea.vmem %s19_s13, 4096  ;;  %p1685_p1 = scmp.lt.s32.totalorder %s19_s13, %s19_s13 }
   0x6   :  { %p1681_p0 = scmp.ne.s32.totalorder %s19_s13, %s1680_s14  ;;  %p1686_p2 = scmp.lt.s32.totalorder %s1680_s14, %s1680_s14 }
   0x8   :  { %p1687_p3 = por %p1686_p2, %p1685_p1 }
   0xa   :  { %p1688_p4 = pnand %p1687_p3, %p1681_p0 }
   0xc   :  { %1691 = shalt.err (!%p1688_p4)
}
   0xd   :  { %s1761_s15 = smov 512   ;;  %s1762_s16 = smov 32  }
   0xe   :  { %24 = dma.hbm_to_vmem [thread:$0]  %s2611_s0, 4096, %s19_s13, [#allocation5], %s1761_s15, %s1761_s15, %s1762_s16  }
   0xf   :  { %s1763_s19 = smov [#allocation7]  }
  0x10   :  { %s30_s20 = sshll.u32 %s1763_s19, 4  ;;  %s31_s20 = int_to_ptr.vmem [resolvable:$true] %s30_s20 }
  0x11   :  { %s1700_s21 = scalar_lea.vmem %s31_s20, 8192  ;;  %p1705_p6 = scmp.lt.s32.totalorder %s31_s20, %s31_s20 }
  0x12   :  { %p1701_p5 = scmp.ne.s32.totalorder %s31_s20, %s1700_s21  ;;  %p1706_p7 = scmp.lt.s32.totalorder %s1700_s21, %s1700_s21 }
  0x14   :  { %p1707_p8 = por %p1706_p7, %p1705_p6 }
  0x16   :  { %p1708_p9 = pnand %p1707_p8, %p1701_p5 }
  0x18   :  { %1711 = shalt.err (!%p1708_p9)
}
  0x19   :  { %36 = dma.hbm_to_vmem [thread:$0]  %s2612_s1, 8192, %s31_s20, [#allocation8], %s1761_s15, %s1761_s15, %s1762_s16  }
  0x1a   :  { %1752 = dma.done.wait [#allocation5], 4096  }
  0x1b   :  { %1753 = vsyncadd [#allocation5], 4294963200 }
  0x1c   :  { %1754 = dma.done.wait [#allocation8], 8192  }
  0x1d   :  { %1755 = vsyncadd [#allocation8], 4294959104  ;;  %v2615_v0 = vmov 0.0   ;;  %v1797_v1 = vld [vmem:[#allocation7 + $0x1e8] sm:$0xff]  ;;  %v1799_v2 = vld [vmem:[#allocation7 + $0x1e0] sm:$0xff]  ;;  %s1765_s0 = smov [#allocation10]  }
  0x1e   :  { %183 = vmatprep.mubr.f32.mxu0 %v2615_v0  ;;  %254 = vmatprep.mubr.f32.mxu1 %v2615_v0  ;;  %2682 = vst [vmem:[#allocation16_spill] sm:$0xff] %v1797_v1  ;;  %v1801_v3 = vld [vmem:[#allocation7 + $0x1c8] sm:$0xff]  ;;  %v1804_v4 = vld [vmem:[#allocation7 + $0x1c0] sm:$0xff]  ;;  %v1809_v6 = vld [vmem:[#allocation7 + $0x1f8] sm:$0xff]  ;;  %s1505_s1 = sshll.u32 %s1765_s0, 4  ;;  %s1506_s1 = int_to_ptr.vmem [resolvable:$true] %s1505_s1 }
  0x1f   :  { %119 = vmatprep.subr.mxu0 %v1797_v1  ;;  %v1807_v5 = vld [vmem:[#allocation7 + $0x1a8] sm:$0xff]  ;;  %2683 = vst [vmem:[#allocation17_spill] sm:$0xff] %v1809_v6  ;;  %v1812_v7 = vld [vmem:[#allocation7 + $0x1a0] sm:$0xff]  ;;  %190 = vmatprep.subr.mxu1 %v1809_v6  ;;  %v1815_v8 = vld [vmem:[#allocation7 + $0x1f0] sm:$0xff]  ;;  %s1712_s24 = scalar_lea.vmem %s1506_s1, 128  ;;  %p1717_p11 = scmp.lt.s32.totalorder %s1506_s1, %s1506_s1 }
  0x20   :  { %120 = vmatpush1.msra.mxu0 %v1799_v2  ;;  %v1817_v9 = vld [vmem:[#allocation7 + $0x1d8] sm:$0xff]  ;;  %v1820_v10 = vld [vmem:[#allocation7 + $0x188] sm:$0xff]  ;;  %191 = vmatpush1.msra.mxu1 %v1815_v8  ;;  %v1823_v11 = vld [vmem:[#allocation7 + $0x1d0] sm:$0xff]  ;;  %p1713_p10 = scmp.ne.s32.totalorder %s1506_s1, %s1712_s24  ;;  %p1718_p12 = scmp.lt.s32.totalorder %s1712_s24, %s1712_s24 }
  0x21   :  { %121 = vmatprep.subr.mxu0 %v1801_v3  ;;  %v1826_v12 = vld [vmem:[#allocation7 + $0x180] sm:$0xff]  ;;  %192 = vmatprep.subr.mxu1 %v1817_v9  ;;  %v1829_v13 = vld [vmem:[#allocation7 + $0x1b8] sm:$0xff]  ;;  %v1831_v14 = vld [vmem:[#allocation7 + $0x1b0] sm:$0xff] }
  0x22   :  { %122 = vmatpush1.msra.mxu0 %v1804_v4  ;;  %v1834_v15 = vld [vmem:[#allocation7 + $0x168] sm:$0xff]  ;;  %193 = vmatpush1.msra.mxu1 %v1823_v11  ;;  %v1837_v16 = vld [vmem:[#allocation7 + $0x198] sm:$0xff]  ;;  %v1840_v17 = vld [vmem:[#allocation7 + $0x160] sm:$0xff]  ;;  %p1719_p13 = por %p1718_p12, %p1717_p11 }
  0x23   :  { %123 = vmatprep.subr.mxu0 %v1807_v5  ;;  %194 = vmatprep.subr.mxu1 %v1829_v13  ;;  %v1843_v18 = vld [vmem:[#allocation7 + $0x190] sm:$0xff]  ;;  %v1846_v19 = vld [vmem:[#allocation7 + $0x148] sm:$0xff]  ;;  %v1849_v20 = vld [vmem:[#allocation7 + $0x178] sm:$0xff] }
  0x24   :  { %124 = vmatpush1.msra.mxu0 %v1812_v7  ;;  %195 = vmatpush1.msra.mxu1 %v1831_v14  ;;  %v1852_v21 = vld [vmem:[#allocation7 + $0x140] sm:$0xff]  ;;  %v1855_v22 = vld [vmem:[#allocation7 + $0x170] sm:$0xff]  ;;  %v1858_v23 = vld [vmem:[#allocation7 + $0x128] sm:$0xff]  ;;  %p1720_p0 = pnand %p1719_p13, %p1713_p10 }
  0x25   :  { %125 = vmatprep.subr.mxu0 %v1820_v10  ;;  %196 = vmatprep.subr.mxu1 %v1837_v16  ;;  %v1861_v24 = vld [vmem:[#allocation7 + $0x158] sm:$0xff]  ;;  %v1864_v25 = vld [vmem:[#allocation7 + $0x120] sm:$0xff]  ;;  %v1867_v26 = vld [vmem:[#allocation7 + $0x150] sm:$0xff] }
  0x26   :  { %126 = vmatpush1.msra.mxu0 %v1826_v12  ;;  %197 = vmatpush1.msra.mxu1 %v1843_v18  ;;  %v1870_v27 = vld [vmem:[#allocation7 + $0x108] sm:$0xff]  ;;  %v1873_v28 = vld [vmem:[#allocation7 + $0x138] sm:$0xff]  ;;  %v1876_v29 = vld [vmem:[#allocation7 + $0x100] sm:$0xff] }
  0x27   :  { %127 = vmatprep.subr.mxu0 %v1834_v15  ;;  %198 = vmatprep.subr.mxu1 %v1849_v20  ;;  %v1879_v30 = vld [vmem:[#allocation7 + $0x130] sm:$0xff]  ;;  %v1882_v31 = vld [vmem:[#allocation7 + $0xe8] sm:$0xff]  ;;  %v1885_v32 = vld [vmem:[#allocation7 + $0x118] sm:$0xff] }
  0x28   :  { %128 = vmatpush1.msra.mxu0 %v1840_v17  ;;  %199 = vmatpush1.msra.mxu1 %v1855_v22  ;;  %v1888_v33 = vld [vmem:[#allocation7 + $0xe0] sm:$0xff]  ;;  %v1891_v34 = vld [vmem:[#allocation7 + $0x110] sm:$0xff]  ;;  %v1894_v35 = vld [vmem:[#allocation7 + $0xc8] sm:$0xff] }
  0x29   :  { %129 = vmatprep.subr.mxu0 %v1846_v19  ;;  %200 = vmatprep.subr.mxu1 %v1861_v24  ;;  %v1897_v36 = vld [vmem:[#allocation7 + $0xf8] sm:$0xff]  ;;  %v1900_v37 = vld [vmem:[#allocation7 + $0xc0] sm:$0xff]  ;;  %v1903_v38 = vld [vmem:[#allocation7 + $0xf0] sm:$0xff] }
  0x2a   :  { %130 = vmatpush1.msra.mxu0 %v1852_v21  ;;  %201 = vmatpush1.msra.mxu1 %v1867_v26  ;;  %v1906_v39 = vld [vmem:[#allocation7 + $0xa8] sm:$0xff]  ;;  %v1909_v40 = vld [vmem:[#allocation7 + $0xd8] sm:$0xff]  ;;  %v1912_v41 = vld [vmem:[#allocation7 + $0xa0] sm:$0xff] }
  0x2b   :  { %131 = vmatprep.subr.mxu0 %v1858_v23  ;;  %202 = vmatprep.subr.mxu1 %v1873_v28  ;;  %v1915_v42 = vld [vmem:[#allocation7 + $0xd0] sm:$0xff]  ;;  %v1918_v43 = vld [vmem:[#allocation7 + $0x88] sm:$0xff]  ;;  %v1921_v44 = vld [vmem:[#allocation7 + $0xb8] sm:$0xff] }
  0x2c   :  { %132 = vmatpush1.msra.mxu0 %v1864_v25  ;;  %203 = vmatpush1.msra.mxu1 %v1879_v30  ;;  %v1924_v45 = vld [vmem:[#allocation7 + $0x80] sm:$0xff]  ;;  %v1927_v46 = vld [vmem:[#allocation7 + $0xb0] sm:$0xff]  ;;  %v1930_v47 = vld [vmem:[#allocation7 + $0x68] sm:$0xff] }
  0x2d   :  { %133 = vmatprep.subr.mxu0 %v1870_v27  ;;  %204 = vmatprep.subr.mxu1 %v1885_v32  ;;  %2684 = vst [vmem:[#allocation18_spill] sm:$0xff] %v1924_v45  ;;  %2685 = vst [vmem:[#allocation19_spill] sm:$0xff] %v1930_v47  ;;  %v1933_v48 = vld [vmem:[#allocation7 + $0x98] sm:$0xff]  ;;  %v1936_v49 = vld [vmem:[#allocation7 + $0x60] sm:$0xff] }
  0x2e   :  { %134 = vmatpush1.msra.mxu0 %v1876_v29  ;;  %205 = vmatpush1.msra.mxu1 %v1891_v34  ;;  %2686 = vst [vmem:[#allocation20_spill] sm:$0xff] %v1933_v48  ;;  %2687 = vst [vmem:[#allocation21_spill] sm:$0xff] %v1936_v49  ;;  %v1939_v50 = vld [vmem:[#allocation7 + $0x90] sm:$0xff]  ;;  %v1942_v51 = vld [vmem:[#allocation7 + $0x48] sm:$0xff] }
  0x2f   :  { %135 = vmatprep.subr.mxu0 %v1882_v31  ;;  %206 = vmatprep.subr.mxu1 %v1897_v36  ;;  %2688 = vst [vmem:[#allocation22_spill] sm:$0xff] %v1939_v50  ;;  %2689 = vst [vmem:[#allocation23_spill] sm:$0xff] %v1942_v51  ;;  %v1945_v52 = vld [vmem:[#allocation7 + $0x78] sm:$0xff]  ;;  %v1948_v53 = vld [vmem:[#allocation7 + $0x40] sm:$0xff] }
  0x30   :  { %136 = vmatpush1.msra.mxu0 %v1888_v33  ;;  %207 = vmatpush1.msra.mxu1 %v1903_v38  ;;  %2690 = vst [vmem:[#allocation24_spill] sm:$0xff] %v1945_v52  ;;  %2691 = vst [vmem:[#allocation25_spill] sm:$0xff] %v1948_v53  ;;  %v1951_v54 = vld [vmem:[#allocation7 + $0x70] sm:$0xff]  ;;  %v1954_v55 = vld [vmem:[#allocation7 + $0x28] sm:$0xff] }
  0x31   :  { %137 = vmatprep.subr.mxu0 %v1894_v35  ;;  %208 = vmatprep.subr.mxu1 %v1909_v40  ;;  %2692 = vst [vmem:[#allocation26_spill] sm:$0xff] %v1951_v54  ;;  %2693 = vst [vmem:[#allocation27_spill] sm:$0xff] %v1954_v55  ;;  %v1957_v56 = vld [vmem:[#allocation7 + $0x58] sm:$0xff]  ;;  %v1960_v57 = vld [vmem:[#allocation7 + $0x20] sm:$0xff] }
  0x32   :  { %138 = vmatpush1.msra.mxu0 %v1900_v37  ;;  %209 = vmatpush1.msra.mxu1 %v1915_v42  ;;  %2694 = vst [vmem:[#allocation28_spill] sm:$0xff] %v1957_v56  ;;  %2695 = vst [vmem:[#allocation29_spill] sm:$0xff] %v1960_v57  ;;  %v1963_v58 = vld [vmem:[#allocation7 + $0x50] sm:$0xff]  ;;  %v1966_v59 = vld [vmem:[#allocation7 + $0x8] sm:$0xff] }
  0x33   :  { %139 = vmatprep.subr.mxu0 %v1906_v39  ;;  %210 = vmatprep.subr.mxu1 %v1921_v44  ;;  %2696 = vst [vmem:[#allocation30_spill] sm:$0xff] %v1963_v58  ;;  %2697 = vst [vmem:[#allocation31_spill] sm:$0xff] %v1966_v59  ;;  %v1969_v60 = vld [vmem:[#allocation7 + $0x38] sm:$0xff]  ;;  %v1972_v61 = vld [vmem:[#allocation7] sm:$0xff] }
  0x34   :  { %140 = vmatpush1.msra.mxu0 %v1912_v41  ;;  %211 = vmatpush1.msra.mxu1 %v1927_v46  ;;  %2698 = vst [vmem:[#allocation32_spill] sm:$0xff] %v1969_v60  ;;  %2699 = vst [vmem:[#allocation33_spill] sm:$0xff] %v1972_v61  ;;  %v1975_v62 = vld [vmem:[#allocation7 + $0x30] sm:$0xff]  ;;  %v1979_v63 = vld [vmem:[#allocation7 + $0x18] sm:$0xff] }
  0x35   :  { %141 = vmatprep.subr.mxu0 %v1918_v43  ;;  %212 = vmatprep.subr.mxu1 %v1933_v48  ;;  %2700 = vst [vmem:[#allocation34_spill] sm:$0xff] %v1975_v62  ;;  %2701 = vst [vmem:[#allocation35_spill] sm:$0xff] %v1979_v63  ;;  %v1983_v0 = vld [vmem:[#allocation7 + $0x10] sm:$0xff] }
  0x36   :  { %142 = vmatpush1.msra.mxu0 %v1924_v45  ;;  %213 = vmatpush1.msra.mxu1 %v1939_v50  ;;  %2702 = vst [vmem:[#allocation36_spill] sm:$0xff] %v1983_v0 }
  0x37   :  { %143 = vmatprep.subr.mxu0 %v1930_v47  ;;  %214 = vmatprep.subr.mxu1 %v1945_v52 }
  0x38   :  { %144 = vmatpush1.msra.mxu0 %v1936_v49  ;;  %215 = vmatpush1.msra.mxu1 %v1951_v54 }
  0x39   :  { %145 = vmatprep.subr.mxu0 %v1942_v51  ;;  %216 = vmatprep.subr.mxu1 %v1957_v56 }
  0x3a   :  { %146 = vmatpush1.msra.mxu0 %v1948_v53  ;;  %217 = vmatpush1.msra.mxu1 %v1963_v58 }
  0x3b   :  { %147 = vmatprep.subr.mxu0 %v1954_v55  ;;  %218 = vmatprep.subr.mxu1 %v1969_v60  ;;  %v2703_v55 = vmov 0.0  }
  0x3c   :  { %148 = vmatpush1.msra.mxu0 %v1960_v57  ;;  %219 = vmatpush1.msra.mxu1 %v1975_v62 }
  0x3d   :  { %149 = vmatprep.subr.mxu0 %v1966_v59  ;;  %220 = vmatprep.subr.mxu1 %v1979_v63 }
  0x3e   :  { %150 = vmatpush1.msra.mxu0 %v1972_v61  ;;  %221 = vmatpush1.msra.mxu1 %v1983_v0 }
  0x3f   :  { %184 = vmatmul.mubr.f32.vlgmr.msra.gmra.mxu0 %v2703_v55  ;;  %289 = vmatprep.subr.mxu0 %v1797_v1 }
  0x40   :  { %255 = vmatmul.mubr.f32.vlgmr.msra.gmra.mxu1 %v2703_v55  ;;  %360 = vmatprep.subr.mxu1 %v1809_v6 }
  0x41   :  { %290 = vmatpush1.msra.mxu0 %v1799_v2  ;;  %361 = vmatpush1.msra.mxu1 %v1815_v8 }
  0x42   :  { %291 = vmatprep.subr.mxu0 %v1801_v3  ;;  %362 = vmatprep.subr.mxu1 %v1817_v9 }
  0x43   :  { %292 = vmatpush1.msra.mxu0 %v1804_v4  ;;  %363 = vmatpush1.msra.mxu1 %v1823_v11 }
  0x44   :  { %293 = vmatprep.subr.mxu0 %v1807_v5  ;;  %364 = vmatprep.subr.mxu1 %v1829_v13 }
  0x45   :  { %294 = vmatpush1.msra.mxu0 %v1812_v7  ;;  %365 = vmatpush1.msra.mxu1 %v1831_v14 }
  0x46   :  { %295 = vmatprep.subr.mxu0 %v1820_v10  ;;  %366 = vmatprep.subr.mxu1 %v1837_v16 }
  0x47   :  { %296 = vmatpush1.msra.mxu0 %v1826_v12  ;;  %367 = vmatpush1.msra.mxu1 %v1843_v18 }
  0x48   :  { %297 = vmatprep.subr.mxu0 %v1834_v15  ;;  %368 = vmatprep.subr.mxu1 %v1849_v20 }
  0x49   :  { %298 = vmatpush1.msra.mxu0 %v1840_v17  ;;  %369 = vmatpush1.msra.mxu1 %v1855_v22 }
  0x4a   :  { %299 = vmatprep.subr.mxu0 %v1846_v19  ;;  %370 = vmatprep.subr.mxu1 %v1861_v24 }
  0x4b   :  { %300 = vmatpush1.msra.mxu0 %v1852_v21  ;;  %371 = vmatpush1.msra.mxu1 %v1867_v26 }
  0x4c   :  { %301 = vmatprep.subr.mxu0 %v1858_v23  ;;  %372 = vmatprep.subr.mxu1 %v1873_v28 }
  0x4d   :  { %302 = vmatpush1.msra.mxu0 %v1864_v25  ;;  %373 = vmatpush1.msra.mxu1 %v1879_v30 }
  0x4e   :  { %303 = vmatprep.subr.mxu0 %v1870_v27  ;;  %374 = vmatprep.subr.mxu1 %v1885_v32 }
  0x4f   :  { %304 = vmatpush1.msra.mxu0 %v1876_v29  ;;  %375 = vmatpush1.msra.mxu1 %v1891_v34 }
  0x50   :  { %305 = vmatprep.subr.mxu0 %v1882_v31  ;;  %376 = vmatprep.subr.mxu1 %v1897_v36 }
  0x51   :  { %306 = vmatpush1.msra.mxu0 %v1888_v33  ;;  %377 = vmatpush1.msra.mxu1 %v1903_v38 }
  0x52   :  { %307 = vmatprep.subr.mxu0 %v1894_v35  ;;  %378 = vmatprep.subr.mxu1 %v1909_v40 }
  0x53   :  { %308 = vmatpush1.msra.mxu0 %v1900_v37  ;;  %379 = vmatpush1.msra.mxu1 %v1915_v42 }
  0x54   :  { %309 = vmatprep.subr.mxu0 %v1906_v39  ;;  %380 = vmatprep.subr.mxu1 %v1921_v44 }
  0x55   :  { %310 = vmatpush1.msra.mxu0 %v1912_v41  ;;  %381 = vmatpush1.msra.mxu1 %v1927_v46 }
  0x56   :  { %311 = vmatprep.subr.mxu0 %v1918_v43  ;;  %382 = vmatprep.subr.mxu1 %v1933_v48  ;;  %v2704_v48 = vld [vmem:[#allocation27_spill] sm:$0xff] }
  0x57   :  { %312 = vmatpush1.msra.mxu0 %v1924_v45  ;;  %383 = vmatpush1.msra.mxu1 %v1939_v50 }
  0x58   :  { %313 = vmatprep.subr.mxu0 %v1930_v47  ;;  %384 = vmatprep.subr.mxu1 %v1945_v52 }
  0x59   :  { %314 = vmatpush1.msra.mxu0 %v1936_v49  ;;  %385 = vmatpush1.msra.mxu1 %v1951_v54 }
  0x5a   :  { %315 = vmatprep.subr.mxu0 %v1942_v51  ;;  %386 = vmatprep.subr.mxu1 %v1957_v56 }
  0x5b   :  { %316 = vmatpush1.msra.mxu0 %v1948_v53  ;;  %387 = vmatpush1.msra.mxu1 %v1963_v58 }
  0x5c   :  { %317 = vmatprep.subr.mxu0 %v2704_v48  ;;  %388 = vmatprep.subr.mxu1 %v1969_v60  ;;  %v115_v60 = vld [vmem:[#allocation4] sm:$0xff]  ;;  %v116_v48 = vld [vmem:[#allocation4 + $0x8] sm:$0xff] }
  0x5d   :  { %318 = vmatpush1.msra.mxu0 %v1960_v57  ;;  %389 = vmatpush1.msra.mxu1 %v1975_v62 }
  0x5e   :  { %319 = vmatprep.subr.mxu0 %v1966_v59  ;;  %390 = vmatprep.subr.mxu1 %v1979_v63  ;;  %v117_v59 = vld [vmem:[#allocation4 + $0x10] sm:$0xff] }
  0x5f   :  { %320 = vmatpush1.msra.mxu0 %v1972_v61  ;;  %353 = vmatprep.mubr.f32.mxu0 %v2703_v55 }
  0x60   :  { %391 = vmatpush1.msra.mxu1 %v1983_v0  ;;  %424 = vmatprep.mubr.f32.mxu1 %v2703_v55  ;;  %v118_v0 = vld [vmem:[#allocation4 + $0x18] sm:$0xff] }
  0x61   :  { %460 = vmatprep.subr.mxu0 %v1797_v1  ;;  %531 = vmatprep.subr.mxu1 %v1809_v6 }
  0xff   :  { %v185_v57 = vpop.f32.mrf.mxu0 }
 0x100   :  { %v261_v62 = vadd.f32 %v185_v57, %v115_v60  ;;  %v256_v53 = vpop.f32.mrf.mxu1 }
 0x101   :  { %v187_v58 = vpop.f32.mrf.mxu0  ;;  %v263_v51 = vadd.f32 %v256_v53, %v117_v59  ;;  %v2714_v59 = vld [vmem:[#allocation25_spill] sm:$0xff] }
 0x102   :  { %v265_v63 = vmul.f32 0.5, %v261_v62  ;;  %v262_v56 = vadd.f32 %v187_v58, %v116_v48  ;;  %v258_v55 = vpop.f32.mrf.mxu1 }
 0x103   :  { %v264_v54 = vadd.f32 %v258_v55, %v118_v0  ;;  %v2713_v55 = vld [vmem:[#allocation28_spill] sm:$0xff] }
 0x104   :  { %1528 = vtanh.f32 %v265_v63  ;;  %v269_v61 = vmul.f32 0.5, %v262_v56  ;;  %v2716_v63 = vld [vmem:[#allocation27_spill] sm:$0xff] }
 0x105   :  { %v274_v1 = vmul.f32 0.5, %v264_v54  ;;  %v2712_v54 = vld [vmem:[#allocation23_spill] sm:$0xff] }
 0x106   :  { %1530 = vtanh.f32 %v269_v61  ;;  %v2715_v61 = vld [vmem:[#allocation30_spill] sm:$0xff] }
 0x107   :  { %1532 = vtanh.f32 %v263_v51 }
 0x108   :  { %1534 = vtanh.f32 %v274_v1  ;;  %v2705_v1 = vld [vmem:[#allocation20_spill] sm:$0xff] }
 0x111   :  { %v1529_v49 = vpop.eup %1528 }
 0x112   :  { %v267_v6 = vadd.f32 1.0, %v1529_v49  ;;  %v2709_v49 = vld [vmem:[#allocation24_spill] sm:$0xff] }
 0x113   :  { %v1531_v52 = vpop.eup %1530 }
 0x114   :  { %v268_v47 = vmul.f32 0.5, %v267_v6  ;;  %v271_v50 = vadd.f32 1.0, %v1531_v52  ;;  %v1533_v57 = vpop.eup %1532  ;;  %v2706_v6 = vld [vmem:[#allocation18_spill] sm:$0xff] }
 0x115   :  { %v1535_v53 = vpop.eup %1534  ;;  %v2711_v52 = vld [vmem:[#allocation26_spill] sm:$0xff] }
 0x116   :  { %v272_v60 = vmul.f32 0.5, %v271_v50  ;;  %v279_v62 = vmul.f32 %v1533_v57, %v268_v47  ;;  %v276_v51 = vadd.f32 1.0, %v1535_v53  ;;  %v2708_v47 = vld [vmem:[#allocation19_spill] sm:$0xff]  ;;  %v2710_v50 = vld [vmem:[#allocation21_spill] sm:$0xff]  ;;  %v2717_v57 = vld [vmem:[#allocation32_spill] sm:$0xff] }
 0x117   :  { %v2720_v53 = vld [vmem:[#allocation31_spill] sm:$0xff] }
 0x118   :  { %v278_v45 = vmul.f32 0.0, %v272_v60  ;;  %v277_v56 = vmul.f32 0.5, %v276_v51  ;;  %v2718_v60 = vld [vmem:[#allocation29_spill] sm:$0xff]  ;;  %v2721_v51 = vld [vmem:[#allocation35_spill] sm:$0xff] }
 0x11a   :  { %v2059_v48 = vadd.f32 %v279_v62, %v278_v45  ;;  %v2707_v45 = vld [vmem:[#allocation22_spill] sm:$0xff] }
 0x11b   :  { %v2719_v62 = vld [vmem:[#allocation34_spill] sm:$0xff] }
 0x11c   :  { %1536 = vtanh.f32 %v2059_v48 }
 0x129   :  { %v1537_v58 = vpop.eup %1536 }
 0x12a   :  { %v282_v0 = vmul.f32 %v1537_v58, %v277_v56  ;;  %v2722_v56 = vld [vmem:[#allocation33_spill] sm:$0xff]  ;;  %v2723_v58 = vmov 0.0  }
 0x12c   :  { %283 = vst [vmem:[#allocation9] sm:$0xff] %v282_v0  ;;  %354 = vmatmul.mubr.f32.vlgmr.msra.gmra.mxu0 %v282_v0  ;;  %425 = vmatmul.mubr.f32.vlgmr.msra.gmra.mxu1 %v282_v0  ;;  %v2724_v0 = vld [vmem:[#allocation36_spill] sm:$0xff] }
 0x12d   :  { %461 = vmatpush1.msra.mxu0 %v1799_v2  ;;  %532 = vmatpush1.msra.mxu1 %v1815_v8 }
 0x12e   :  { %462 = vmatprep.subr.mxu0 %v1801_v3  ;;  %533 = vmatprep.subr.mxu1 %v1817_v9 }
 0x12f   :  { %463 = vmatpush1.msra.mxu0 %v1804_v4  ;;  %534 = vmatpush1.msra.mxu1 %v1823_v11 }
 0x130   :  { %464 = vmatprep.subr.mxu0 %v1807_v5  ;;  %535 = vmatprep.subr.mxu1 %v1829_v13 }
 0x131   :  { %465 = vmatpush1.msra.mxu0 %v1812_v7  ;;  %536 = vmatpush1.msra.mxu1 %v1831_v14 }
 0x132   :  { %466 = vmatprep.subr.mxu0 %v1820_v10  ;;  %537 = vmatprep.subr.mxu1 %v1837_v16 }
 0x133   :  { %467 = vmatpush1.msra.mxu0 %v1826_v12  ;;  %538 = vmatpush1.msra.mxu1 %v1843_v18 }
 0x134   :  { %468 = vmatprep.subr.mxu0 %v1834_v15  ;;  %539 = vmatprep.subr.mxu1 %v1849_v20 }
 0x135   :  { %469 = vmatpush1.msra.mxu0 %v1840_v17  ;;  %540 = vmatpush1.msra.mxu1 %v1855_v22 }
 0x136   :  { %470 = vmatprep.subr.mxu0 %v1846_v19  ;;  %541 = vmatprep.subr.mxu1 %v1861_v24 }
 0x137   :  { %471 = vmatpush1.msra.mxu0 %v1852_v21  ;;  %542 = vmatpush1.msra.mxu1 %v1867_v26 }
 0x138   :  { %472 = vmatprep.subr.mxu0 %v1858_v23  ;;  %543 = vmatprep.subr.mxu1 %v1873_v28 }
 0x139   :  { %473 = vmatpush1.msra.mxu0 %v1864_v25  ;;  %544 = vmatpush1.msra.mxu1 %v1879_v30 }
 0x13a   :  { %474 = vmatprep.subr.mxu0 %v1870_v27  ;;  %545 = vmatprep.subr.mxu1 %v1885_v32 }
 0x13b   :  { %475 = vmatpush1.msra.mxu0 %v1876_v29  ;;  %546 = vmatpush1.msra.mxu1 %v1891_v34 }
 0x13c   :  { %476 = vmatprep.subr.mxu0 %v1882_v31  ;;  %547 = vmatprep.subr.mxu1 %v1897_v36 }
 0x13d   :  { %477 = vmatpush1.msra.mxu0 %v1888_v33  ;;  %548 = vmatpush1.msra.mxu1 %v1903_v38 }
 0x13e   :  { %478 = vmatprep.subr.mxu0 %v1894_v35  ;;  %549 = vmatprep.subr.mxu1 %v1909_v40 }
 0x13f   :  { %479 = vmatpush1.msra.mxu0 %v1900_v37  ;;  %550 = vmatpush1.msra.mxu1 %v1915_v42 }
 0x140   :  { %480 = vmatprep.subr.mxu0 %v1906_v39  ;;  %551 = vmatprep.subr.mxu1 %v1921_v44 }
 0x141   :  { %481 = vmatpush1.msra.mxu0 %v1912_v41  ;;  %552 = vmatpush1.msra.mxu1 %v1927_v46 }
 0x142   :  { %482 = vmatprep.subr.mxu0 %v1918_v43  ;;  %553 = vmatprep.subr.mxu1 %v2705_v1 }
 0x143   :  { %483 = vmatpush1.msra.mxu0 %v2706_v6  ;;  %554 = vmatpush1.msra.mxu1 %v2707_v45 }
 0x144   :  { %484 = vmatprep.subr.mxu0 %v2708_v47  ;;  %555 = vmatprep.subr.mxu1 %v2709_v49 }
 0x145   :  { %485 = vmatpush1.msra.mxu0 %v2710_v50  ;;  %556 = vmatpush1.msra.mxu1 %v2711_v52 }
 0x146   :  { %486 = vmatprep.subr.mxu0 %v2712_v54  ;;  %557 = vmatprep.subr.mxu1 %v2713_v55 }
 0x147   :  { %487 = vmatpush1.msra.mxu0 %v2714_v59  ;;  %558 = vmatpush1.msra.mxu1 %v2715_v61  ;;  %v2725_v61 = vld [vmem:[#allocation16_spill] sm:$0xff] }
 0x148   :  { %488 = vmatprep.subr.mxu0 %v2716_v63  ;;  %559 = vmatprep.subr.mxu1 %v2717_v57  ;;  %v2726_v63 = vld [vmem:[#allocation17_spill] sm:$0xff]  ;;  %v285_v57 = vld [vmem:[#allocation4 + $0x20] sm:$0xff]  ;;  %v286_v59 = vld [vmem:[#allocation4 + $0x28] sm:$0xff] }
 0x149   :  { %489 = vmatpush1.msra.mxu0 %v2718_v60  ;;  %560 = vmatpush1.msra.mxu1 %v2719_v62 }
 0x14a   :  { %490 = vmatprep.subr.mxu0 %v2720_v53  ;;  %561 = vmatprep.subr.mxu1 %v2721_v51  ;;  %v287_v51 = vld [vmem:[#allocation4 + $0x30] sm:$0xff] }
 0x14b   :  { %491 = vmatpush1.msra.mxu0 %v2722_v56  ;;  %524 = vmatprep.mubr.f32.mxu0 %v2723_v58 }
 0x14c   :  { %562 = vmatpush1.msra.mxu1 %v2724_v0  ;;  %595 = vmatprep.mubr.f32.mxu1 %v2723_v58  ;;  %v288_v0 = vld [vmem:[#allocation4 + $0x38] sm:$0xff] }
 0x14d   :  { %631 = vmatprep.subr.mxu0 %v2725_v61  ;;  %702 = vmatprep.subr.mxu1 %v2726_v63 }
 0x1ec   :  { %v355_v60 = vpop.f32.mrf.mxu0  ;;  %v426_v52 = vpop.f32.mrf.mxu1 }
 0x1ed   :  { %v431_v62 = vadd.f32 %v355_v60, %v285_v57  ;;  %v433_v50 = vadd.f32 %v426_v52, %v287_v51  ;;  %v2734_v51 = vld [vmem:[#allocation23_spill] sm:$0xff] }
 0x1ee   :  { %v357_v55 = vpop.f32.mrf.mxu0  ;;  %v428_v49 = vpop.f32.mrf.mxu1 }
 0x1ef   :  { %v435_v53 = vmul.f32 0.5, %v431_v62  ;;  %v432_v54 = vadd.f32 %v357_v55, %v286_v59  ;;  %v434_v58 = vadd.f32 %v428_v49, %v288_v0  ;;  %v2737_v0 = vld [vmem:[#allocation30_spill] sm:$0xff] }
 0x1f1   :  { %1538 = vtanh.f32 %v435_v53  ;;  %v439_v56 = vmul.f32 0.5, %v432_v54  ;;  %v444_v61 = vmul.f32 0.5, %v434_v58  ;;  %v2736_v58 = vld [vmem:[#allocation25_spill] sm:$0xff] }
 0x1f3   :  { %1540 = vtanh.f32 %v439_v56  ;;  %v2735_v56 = vld [vmem:[#allocation28_spill] sm:$0xff] }
 0x1f4   :  { %1542 = vtanh.f32 %v433_v50 }
 0x1f5   :  { %1544 = vtanh.f32 %v444_v61  ;;  %v2732_v61 = vld [vmem:[#allocation21_spill] sm:$0xff] }
 0x1fe   :  { %v1539_v47 = vpop.eup %1538 }
 0x1ff   :  { %v437_v63 = vadd.f32 1.0, %v1539_v47  ;;  %v2731_v47 = vld [vmem:[#allocation24_spill] sm:$0xff] }
 0x200   :  { %v1541_v45 = vpop.eup %1540 }
 0x201   :  { %v438_v6 = vmul.f32 0.5, %v437_v63  ;;  %v441_v1 = vadd.f32 1.0, %v1541_v45  ;;  %v1543_v60 = vpop.eup %1542  ;;  %v2730_v45 = vld [vmem:[#allocation19_spill] sm:$0xff]  ;;  %v2733_v63 = vld [vmem:[#allocation26_spill] sm:$0xff] }
 0x202   :  { %v1545_v52 = vpop.eup %1544 }
 0x203   :  { %v442_v57 = vmul.f32 0.5, %v441_v1  ;;  %v449_v59 = vmul.f32 %v1543_v60, %v438_v6  ;;  %v446_v54 = vadd.f32 1.0, %v1545_v52  ;;  %v2728_v1 = vld [vmem:[#allocation18_spill] sm:$0xff]  ;;  %v2739_v60 = vld [vmem:[#allocation32_spill] sm:$0xff]  ;;  %v2742_v52 = vld [vmem:[#allocation31_spill] sm:$0xff] }
 0x204   :  { %v2729_v6 = vld [vmem:[#allocation22_spill] sm:$0xff] }
 0x205   :  { %v448_v55 = vmul.f32 %v442_v57, %v2059_v48  ;;  %v447_v50 = vmul.f32 0.5, %v446_v54  ;;  %v2727_v48 = vld [vmem:[#allocation20_spill] sm:$0xff]  ;;  %v2738_v57 = vld [vmem:[#allocation27_spill] sm:$0xff] }
 0x206   :  { %v2743_v54 = vld [vmem:[#allocation35_spill] sm:$0xff] }
 0x207   :  { %v2129_v62 = vadd.f32 %v449_v59, %v448_v55  ;;  %v2740_v55 = vld [vmem:[#allocation29_spill] sm:$0xff]  ;;  %v2741_v59 = vld [vmem:[#allocation34_spill] sm:$0xff] }
 0x209   :  { %1546 = vtanh.f32 %v2129_v62 }
 0x216   :  { %v1547_v49 = vpop.eup %1546 }
 0x217   :  { %v452_v53 = vmul.f32 %v1547_v49, %v447_v50  ;;  %v2744_v50 = vld [vmem:[#allocation33_spill] sm:$0xff]  ;;  %v2745_v49 = vmov 0.0  }
 0x219   :  { %454 = vst [vmem:[#allocation9 + $0x8] sm:$0xff] %v452_v53  ;;  %525 = vmatmul.mubr.f32.vlgmr.msra.gmra.mxu0 %v452_v53  ;;  %596 = vmatmul.mubr.f32.vlgmr.msra.gmra.mxu1 %v452_v53  ;;  %v2746_v53 = vld [vmem:[#allocation36_spill] sm:$0xff] }
 0x21a   :  { %632 = vmatpush1.msra.mxu0 %v1799_v2  ;;  %703 = vmatpush1.msra.mxu1 %v1815_v8 }
 0x21b   :  { %633 = vmatprep.subr.mxu0 %v1801_v3  ;;  %704 = vmatprep.subr.mxu1 %v1817_v9 }
 0x21c   :  { %634 = vmatpush1.msra.mxu0 %v1804_v4  ;;  %705 = vmatpush1.msra.mxu1 %v1823_v11 }
 0x21d   :  { %635 = vmatprep.subr.mxu0 %v1807_v5  ;;  %706 = vmatprep.subr.mxu1 %v1829_v13 }
 0x21e   :  { %636 = vmatpush1.msra.mxu0 %v1812_v7  ;;  %707 = vmatpush1.msra.mxu1 %v1831_v14 }
 0x21f   :  { %637 = vmatprep.subr.mxu0 %v1820_v10  ;;  %708 = vmatprep.subr.mxu1 %v1837_v16 }
 0x220   :  { %638 = vmatpush1.msra.mxu0 %v1826_v12  ;;  %709 = vmatpush1.msra.mxu1 %v1843_v18 }
 0x221   :  { %639 = vmatprep.subr.mxu0 %v1834_v15  ;;  %710 = vmatprep.subr.mxu1 %v1849_v20 }
 0x222   :  { %640 = vmatpush1.msra.mxu0 %v1840_v17  ;;  %711 = vmatpush1.msra.mxu1 %v1855_v22 }
 0x223   :  { %641 = vmatprep.subr.mxu0 %v1846_v19  ;;  %712 = vmatprep.subr.mxu1 %v1861_v24 }
 0x224   :  { %642 = vmatpush1.msra.mxu0 %v1852_v21  ;;  %713 = vmatpush1.msra.mxu1 %v1867_v26 }
 0x225   :  { %643 = vmatprep.subr.mxu0 %v1858_v23  ;;  %714 = vmatprep.subr.mxu1 %v1873_v28 }
 0x226   :  { %644 = vmatpush1.msra.mxu0 %v1864_v25  ;;  %715 = vmatpush1.msra.mxu1 %v1879_v30 }
 0x227   :  { %645 = vmatprep.subr.mxu0 %v1870_v27  ;;  %716 = vmatprep.subr.mxu1 %v1885_v32 }
 0x228   :  { %646 = vmatpush1.msra.mxu0 %v1876_v29  ;;  %717 = vmatpush1.msra.mxu1 %v1891_v34 }
 0x229   :  { %647 = vmatprep.subr.mxu0 %v1882_v31  ;;  %718 = vmatprep.subr.mxu1 %v1897_v36 }
 0x22a   :  { %648 = vmatpush1.msra.mxu0 %v1888_v33  ;;  %719 = vmatpush1.msra.mxu1 %v1903_v38 }
 0x22b   :  { %649 = vmatprep.subr.mxu0 %v1894_v35  ;;  %720 = vmatprep.subr.mxu1 %v1909_v40 }
 0x22c   :  { %650 = vmatpush1.msra.mxu0 %v1900_v37  ;;  %721 = vmatpush1.msra.mxu1 %v1915_v42 }
 0x22d   :  { %651 = vmatprep.subr.mxu0 %v1906_v39  ;;  %722 = vmatprep.subr.mxu1 %v1921_v44 }
 0x22e   :  { %652 = vmatpush1.msra.mxu0 %v1912_v41  ;;  %723 = vmatpush1.msra.mxu1 %v1927_v46 }
 0x22f   :  { %653 = vmatprep.subr.mxu0 %v1918_v43  ;;  %724 = vmatprep.subr.mxu1 %v2727_v48 }
 0x230   :  { %654 = vmatpush1.msra.mxu0 %v2728_v1  ;;  %725 = vmatpush1.msra.mxu1 %v2729_v6 }
 0x231   :  { %655 = vmatprep.subr.mxu0 %v2730_v45  ;;  %726 = vmatprep.subr.mxu1 %v2731_v47 }
 0x232   :  { %656 = vmatpush1.msra.mxu0 %v2732_v61  ;;  %727 = vmatpush1.msra.mxu1 %v2733_v63 }
 0x233   :  { %657 = vmatprep.subr.mxu0 %v2734_v51  ;;  %728 = vmatprep.subr.mxu1 %v2735_v56 }
 0x234   :  { %658 = vmatpush1.msra.mxu0 %v2736_v58  ;;  %729 = vmatpush1.msra.mxu1 %v2737_v0  ;;  %v2747_v0 = vld [vmem:[#allocation16_spill] sm:$0xff] }
 0x235   :  { %659 = vmatprep.subr.mxu0 %v2738_v57  ;;  %730 = vmatprep.subr.mxu1 %v2739_v60  ;;  %v2748_v57 = vld [vmem:[#allocation17_spill] sm:$0xff]  ;;  %v456_v60 = vld [vmem:[#allocation4 + $0x40] sm:$0xff]  ;;  %v457_v58 = vld [vmem:[#allocation4 + $0x48] sm:$0xff] }
 0x236   :  { %660 = vmatpush1.msra.mxu0 %v2740_v55  ;;  %731 = vmatpush1.msra.mxu1 %v2741_v59 }
 0x237   :  { %661 = vmatprep.subr.mxu0 %v2742_v52  ;;  %732 = vmatprep.subr.mxu1 %v2743_v54  ;;  %v458_v54 = vld [vmem:[#allocation4 + $0x50] sm:$0xff] }
 0x238   :  { %662 = vmatpush1.msra.mxu0 %v2744_v50  ;;  %695 = vmatprep.mubr.f32.mxu0 %v2745_v49 }
 0x239   :  { %733 = vmatpush1.msra.mxu1 %v2746_v53  ;;  %766 = vmatprep.mubr.f32.mxu1 %v2745_v49  ;;  %v459_v53 = vld [vmem:[#allocation4 + $0x58] sm:$0xff] }
 0x23a   :  { %802 = vmatprep.subr.mxu0 %v2747_v0  ;;  %873 = vmatprep.subr.mxu1 %v2748_v57 }
 0x2d9   :  { %v526_v55 = vpop.f32.mrf.mxu0  ;;  %v597_v63 = vpop.f32.mrf.mxu1 }
 0x2da   :  { %v602_v59 = vadd.f32 %v526_v55, %v456_v60  ;;  %v604_v61 = vadd.f32 %v597_v63, %v458_v54 }
 0x2db   :  { %v528_v56 = vpop.f32.mrf.mxu0  ;;  %v599_v47 = vpop.f32.mrf.mxu1 }
 0x2dc   :  { %v606_v52 = vmul.f32 0.5, %v602_v59  ;;  %v603_v51 = vadd.f32 %v528_v56, %v457_v58  ;;  %v605_v49 = vadd.f32 %v599_v47, %v459_v53 }
 0x2de   :  { %1548 = vtanh.f32 %v606_v52  ;;  %v610_v50 = vmul.f32 0.5, %v603_v51  ;;  %v615_v0 = vmul.f32 0.5, %v605_v49 }
 0x2e0   :  { %1550 = vtanh.f32 %v610_v50 }
 0x2e1   :  { %1552 = vtanh.f32 %v604_v61 }
 0x2e2   :  { %1554 = vtanh.f32 %v615_v0 }
 0x2eb   :  { %v1549_v45 = vpop.eup %1548 }
 0x2ec   :  { %v608_v57 = vadd.f32 1.0, %v1549_v45 }
 0x2ed   :  { %v1551_v6 = vpop.eup %1550 }
 0x2ee   :  { %v609_v1 = vmul.f32 0.5, %v608_v57  ;;  %v612_v48 = vadd.f32 1.0, %v1551_v6  ;;  %v1553_v55 = vpop.eup %1552 }
 0x2ef   :  { %v1555_v63 = vpop.eup %1554 }
 0x2f0   :  { %v613_v60 = vmul.f32 0.5, %v612_v48  ;;  %v620_v58 = vmul.f32 %v1553_v55, %v609_v1  ;;  %v617_v51 = vadd.f32 1.0, %v1555_v63  ;;  %v2275_v63 = vld [vmem:[#allocation7 + $0x1f0] sm:$0xff] }
 0x2f2   :  { %v619_v56 = vmul.f32 %v613_v60, %v2129_v62  ;;  %v618_v61 = vmul.f32 0.5, %v617_v51  ;;  %v2281_v51 = vld [vmem:[#allocation7 + $0x1d8] sm:$0xff] }
 0x2f4   :  { %v2199_v59 = vadd.f32 %v620_v58, %v619_v56  ;;  %v2272_v58 = vld [vmem:[#allocation7 + $0x1e0] sm:$0xff] }
 0x2f6   :  { %1556 = vtanh.f32 %v2199_v59 }
 0x303   :  { %v1557_v47 = vpop.eup %1556 }
 0x304   :  { %v623_v52 = vmul.f32 %v1557_v47, %v618_v61  ;;  %v2284_v61 = vld [vmem:[#allocation7 + $0x1c0] sm:$0xff]  ;;  %v2287_v47 = vld [vmem:[#allocation7 + $0x1d0] sm:$0xff] }
 0x306   :  { %625 = vst [vmem:[#allocation9 + $0x10] sm:$0xff] %v623_v52  ;;  %696 = vmatmul.mubr.f32.vlgmr.msra.gmra.mxu0 %v623_v52  ;;  %767 = vmatmul.mubr.f32.vlgmr.msra.gmra.mxu1 %v623_v52  ;;  %v2290_v52 = vld [vmem:[#allocation7 + $0x1a8] sm:$0xff] }
 0x307   :  { %803 = vmatpush1.msra.mxu0 %v1799_v2  ;;  %874 = vmatpush1.msra.mxu1 %v1815_v8  ;;  %v2749_v2 = vld [vmem:[#allocation20_spill] sm:$0xff]  ;;  %v2754_v8 = vld [vmem:[#allocation21_spill] sm:$0xff] }
 0x308   :  { %804 = vmatprep.subr.mxu0 %v1801_v3  ;;  %875 = vmatprep.subr.mxu1 %v1817_v9  ;;  %v2750_v3 = vld [vmem:[#allocation18_spill] sm:$0xff] }
 0x309   :  { %805 = vmatpush1.msra.mxu0 %v1804_v4  ;;  %876 = vmatpush1.msra.mxu1 %v1823_v11  ;;  %v2751_v4 = vld [vmem:[#allocation22_spill] sm:$0xff]  ;;  %v2757_v11 = vld [vmem:[#allocation28_spill] sm:$0xff] }
 0x30a   :  { %806 = vmatprep.subr.mxu0 %v1807_v5  ;;  %877 = vmatprep.subr.mxu1 %v1829_v13  ;;  %v2752_v5 = vld [vmem:[#allocation19_spill] sm:$0xff]  ;;  %v2755_v9 = vld [vmem:[#allocation26_spill] sm:$0xff] }
 0x30b   :  { %807 = vmatpush1.msra.mxu0 %v1812_v7  ;;  %878 = vmatpush1.msra.mxu1 %v1831_v14  ;;  %v2753_v7 = vld [vmem:[#allocation24_spill] sm:$0xff]  ;;  %v2759_v13 = vld [vmem:[#allocation30_spill] sm:$0xff]  ;;  %v2760_v14 = vld [vmem:[#allocation27_spill] sm:$0xff] }
 0x30c   :  { %808 = vmatprep.subr.mxu0 %v1820_v10  ;;  %879 = vmatprep.subr.mxu1 %v1837_v16  ;;  %v2756_v10 = vld [vmem:[#allocation23_spill] sm:$0xff]  ;;  %v2762_v16 = vld [vmem:[#allocation29_spill] sm:$0xff] }
 0x30d   :  { %809 = vmatpush1.msra.mxu0 %v1826_v12  ;;  %880 = vmatpush1.msra.mxu1 %v1843_v18  ;;  %v2758_v12 = vld [vmem:[#allocation25_spill] sm:$0xff]  ;;  %v2764_v18 = vld [vmem:[#allocation31_spill] sm:$0xff] }
 0x30e   :  { %810 = vmatprep.subr.mxu0 %v1834_v15  ;;  %881 = vmatprep.subr.mxu1 %v1849_v20  ;;  %v2761_v15 = vld [vmem:[#allocation32_spill] sm:$0xff]  ;;  %v2766_v20 = vld [vmem:[#allocation33_spill] sm:$0xff] }
 0x30f   :  { %811 = vmatpush1.msra.mxu0 %v1840_v17  ;;  %882 = vmatpush1.msra.mxu1 %v1855_v22  ;;  %v2763_v17 = vld [vmem:[#allocation34_spill] sm:$0xff]  ;;  %v2768_v22 = vld [vmem:[#allocation36_spill] sm:$0xff] }
 0x310   :  { %812 = vmatprep.subr.mxu0 %v1846_v19  ;;  %883 = vmatprep.subr.mxu1 %v1861_v24  ;;  %v2765_v19 = vld [vmem:[#allocation35_spill] sm:$0xff]  ;;  %v2770_v24 = vld [vmem:[#allocation17_spill] sm:$0xff] }
 0x311   :  { %813 = vmatpush1.msra.mxu0 %v1852_v21  ;;  %884 = vmatpush1.msra.mxu1 %v1867_v26  ;;  %v2767_v21 = vmov 0.0  }
 0x312   :  { %814 = vmatprep.subr.mxu0 %v1858_v23  ;;  %885 = vmatprep.subr.mxu1 %v1873_v28  ;;  %v2769_v23 = vld [vmem:[#allocation16_spill] sm:$0xff] }
 0x313   :  { %815 = vmatpush1.msra.mxu0 %v1864_v25  ;;  %886 = vmatpush1.msra.mxu1 %v1879_v30  ;;  %v627_v25 = vld [vmem:[#allocation4 + $0x60] sm:$0xff] }
 0x314   :  { %816 = vmatprep.subr.mxu0 %v1870_v27  ;;  %887 = vmatprep.subr.mxu1 %v1885_v32  ;;  %v628_v27 = vld [vmem:[#allocation4 + $0x68] sm:$0xff]  ;;  %v629_v32 = vld [vmem:[#allocation4 + $0x70] sm:$0xff] }
 0x315   :  { %817 = vmatpush1.msra.mxu0 %v1876_v29  ;;  %888 = vmatpush1.msra.mxu1 %v1891_v34 }
 0x316   :  { %818 = vmatprep.subr.mxu0 %v1882_v31  ;;  %889 = vmatprep.subr.mxu1 %v1897_v36  ;;  %v630_v36 = vld [vmem:[#allocation4 + $0x78] sm:$0xff] }
 0x317   :  { %819 = vmatpush1.msra.mxu0 %v1888_v33  ;;  %890 = vmatpush1.msra.mxu1 %v1903_v38 }
 0x318   :  { %820 = vmatprep.subr.mxu0 %v1894_v35  ;;  %891 = vmatprep.subr.mxu1 %v1909_v40 }
 0x319   :  { %821 = vmatpush1.msra.mxu0 %v1900_v37  ;;  %892 = vmatpush1.msra.mxu1 %v1915_v42 }
 0x31a   :  { %822 = vmatprep.subr.mxu0 %v1906_v39  ;;  %893 = vmatprep.subr.mxu1 %v1921_v44 }
 0x31b   :  { %823 = vmatpush1.msra.mxu0 %v1912_v41  ;;  %894 = vmatpush1.msra.mxu1 %v1927_v46 }
 0x31c   :  { %824 = vmatprep.subr.mxu0 %v1918_v43  ;;  %895 = vmatprep.subr.mxu1 %v2749_v2 }
 0x31d   :  { %825 = vmatpush1.msra.mxu0 %v2750_v3  ;;  %896 = vmatpush1.msra.mxu1 %v2751_v4 }
 0x31e   :  { %826 = vmatprep.subr.mxu0 %v2752_v5  ;;  %897 = vmatprep.subr.mxu1 %v2753_v7 }
 0x31f   :  { %827 = vmatpush1.msra.mxu0 %v2754_v8  ;;  %898 = vmatpush1.msra.mxu1 %v2755_v9 }
 0x320   :  { %828 = vmatprep.subr.mxu0 %v2756_v10  ;;  %899 = vmatprep.subr.mxu1 %v2757_v11 }
 0x321   :  { %829 = vmatpush1.msra.mxu0 %v2758_v12  ;;  %900 = vmatpush1.msra.mxu1 %v2759_v13 }
 0x322   :  { %830 = vmatprep.subr.mxu0 %v2760_v14  ;;  %901 = vmatprep.subr.mxu1 %v2761_v15 }
 0x323   :  { %831 = vmatpush1.msra.mxu0 %v2762_v16  ;;  %902 = vmatpush1.msra.mxu1 %v2763_v17 }
 0x324   :  { %832 = vmatprep.subr.mxu0 %v2764_v18  ;;  %903 = vmatprep.subr.mxu1 %v2765_v19 }
 0x325   :  { %833 = vmatpush1.msra.mxu0 %v2766_v20  ;;  %866 = vmatprep.mubr.f32.mxu0 %v2767_v21 }
 0x326   :  { %904 = vmatpush1.msra.mxu1 %v2768_v22  ;;  %937 = vmatprep.mubr.f32.mxu1 %v2767_v21 }
 0x327   :  { %973 = vmatprep.subr.mxu0 %v2769_v23  ;;  %1044 = vmatprep.subr.mxu1 %v2770_v24  ;;  %v2293_v23 = vld [vmem:[#allocation7 + $0x1b8] sm:$0xff]  ;;  %v2296_v24 = vld [vmem:[#allocation7 + $0x1a0] sm:$0xff] }
 0x3c6   :  { %v697_v26 = vpop.f32.mrf.mxu0  ;;  %v768_v33 = vpop.f32.mrf.mxu1 }
 0x3c7   :  { %v773_v28 = vadd.f32 %v697_v26, %v627_v25  ;;  %v775_v35 = vadd.f32 %v768_v33, %v629_v32  ;;  %v2299_v25 = vld [vmem:[#allocation7 + $0x1b0] sm:$0xff]  ;;  %v2302_v26 = vld [vmem:[#allocation7 + $0x188] sm:$0xff]  ;;  %v2320_v32 = vld [vmem:[#allocation7 + $0x160] sm:$0xff] }
 0x3c8   :  { %v699_v29 = vpop.f32.mrf.mxu0  ;;  %v770_v37 = vpop.f32.mrf.mxu1  ;;  %v2323_v33 = vld [vmem:[#allocation7 + $0x170] sm:$0xff] }
 0x3c9   :  { %v777_v30 = vmul.f32 0.5, %v773_v28  ;;  %v774_v31 = vadd.f32 %v699_v29, %v628_v27  ;;  %v776_v38 = vadd.f32 %v770_v37, %v630_v36  ;;  %v2305_v27 = vld [vmem:[#allocation7 + $0x198] sm:$0xff]  ;;  %v2308_v28 = vld [vmem:[#allocation7 + $0x180] sm:$0xff]  ;;  %v2311_v29 = vld [vmem:[#allocation7 + $0x190] sm:$0xff] }
 0x3ca   :  { %v2332_v36 = vld [vmem:[#allocation7 + $0x140] sm:$0xff]  ;;  %v2335_v37 = vld [vmem:[#allocation7 + $0x150] sm:$0xff] }
 0x3cb   :  { %1558 = vtanh.f32 %v777_v30  ;;  %v781_v34 = vmul.f32 0.5, %v774_v31  ;;  %v786_v39 = vmul.f32 0.5, %v776_v38  ;;  %v2314_v30 = vld [vmem:[#allocation7 + $0x168] sm:$0xff]  ;;  %v2317_v31 = vld [vmem:[#allocation7 + $0x178] sm:$0xff] }
 0x3cc   :  { %v2338_v38 = vld [vmem:[#allocation7 + $0x128] sm:$0xff] }
 0x3cd   :  { %1560 = vtanh.f32 %v781_v34  ;;  %v2326_v34 = vld [vmem:[#allocation7 + $0x148] sm:$0xff] }
 0x3ce   :  { %1562 = vtanh.f32 %v775_v35  ;;  %v2329_v35 = vld [vmem:[#allocation7 + $0x158] sm:$0xff] }
 0x3cf   :  { %1564 = vtanh.f32 %v786_v39  ;;  %v2341_v39 = vld [vmem:[#allocation7 + $0x138] sm:$0xff] }
 0x3d8   :  { %v1559_v41 = vpop.eup %1558 }
 0x3d9   :  { %v779_v62 = vadd.f32 1.0, %v1559_v41  ;;  %v2344_v41 = vld [vmem:[#allocation7 + $0x120] sm:$0xff] }
 0x3da   :  { %v1561_v48 = vpop.eup %1560 }
 0x3db   :  { %v780_v1 = vmul.f32 0.5, %v779_v62  ;;  %v783_v6 = vadd.f32 1.0, %v1561_v48  ;;  %v1563_v0 = vpop.eup %1562  ;;  %v2347_v62 = vld [vmem:[#allocation7 + $0x130] sm:$0xff]  ;;  %v2350_v48 = vld [vmem:[#allocation7 + $0x108] sm:$0xff] }
 0x3dc   :  { %v1565_v49 = vpop.eup %1564 }
 0x3dd   :  { %v784_v45 = vmul.f32 0.5, %v783_v6  ;;  %v791_v54 = vmul.f32 %v1563_v0, %v780_v1  ;;  %v788_v53 = vadd.f32 1.0, %v1565_v49  ;;  %v2353_v1 = vld [vmem:[#allocation7 + $0x118] sm:$0xff]  ;;  %v2356_v6 = vld [vmem:[#allocation7 + $0x100] sm:$0xff]  ;;  %v2362_v0 = vld [vmem:[#allocation7 + $0xe8] sm:$0xff] }
 0x3de   :  { %v2371_v49 = vld [vmem:[#allocation7 + $0xf0] sm:$0xff] }
 0x3df   :  { %v790_v57 = vmul.f32 %v784_v45, %v2199_v59  ;;  %v789_v60 = vmul.f32 0.5, %v788_v53  ;;  %v2278_v59 = vld [vmem:[#allocation7 + $0x1c8] sm:$0xff]  ;;  %v2359_v45 = vld [vmem:[#allocation7 + $0x110] sm:$0xff] }
 0x3e0   :  { %v2374_v53 = vld [vmem:[#allocation7 + $0xc8] sm:$0xff] }
 0x3e1   :  { %v2269_v50 = vadd.f32 %v791_v54, %v790_v57  ;;  %v2365_v57 = vld [vmem:[#allocation7 + $0xf8] sm:$0xff]  ;;  %v2368_v54 = vld [vmem:[#allocation7 + $0xe0] sm:$0xff] }
 0x3e3   :  { %1566 = vtanh.f32 %v2269_v50 }
 0x3f0   :  { %v1567_v55 = vpop.eup %1566 }
 0x3f1   :  { %v794_v56 = vmul.f32 %v1567_v55, %v789_v60  ;;  %v2378_v60 = vld [vmem:[#allocation7 + $0xc0] sm:$0xff]  ;;  %v2382_v55 = vld [vmem:[#allocation7 + $0xa8] sm:$0xff] }
 0x3f3   :  { %796 = vst [vmem:[#allocation9 + $0x18] sm:$0xff] %v794_v56  ;;  %867 = vmatmul.mubr.f32.vlgmr.msra.gmra.mxu0 %v794_v56  ;;  %938 = vmatmul.mubr.f32.vlgmr.msra.gmra.mxu1 %v794_v56  ;;  %v2386_v56 = vld [vmem:[#allocation7 + $0xa0] sm:$0xff] }
 0x3f4   :  { %974 = vmatpush1.msra.mxu0 %v2272_v58  ;;  %1045 = vmatpush1.msra.mxu1 %v2275_v63 }
 0x3f5   :  { %975 = vmatprep.subr.mxu0 %v2278_v59  ;;  %1046 = vmatprep.subr.mxu1 %v2281_v51 }
 0x3f6   :  { %976 = vmatpush1.msra.mxu0 %v2284_v61  ;;  %1047 = vmatpush1.msra.mxu1 %v2287_v47 }
 0x3f7   :  { %977 = vmatprep.subr.mxu0 %v2290_v52  ;;  %1048 = vmatprep.subr.mxu1 %v2293_v23 }
 0x3f8   :  { %978 = vmatpush1.msra.mxu0 %v2296_v24  ;;  %1049 = vmatpush1.msra.mxu1 %v2299_v25 }
 0x3f9   :  { %979 = vmatprep.subr.mxu0 %v2302_v26  ;;  %1050 = vmatprep.subr.mxu1 %v2305_v27 }
 0x3fa   :  { %980 = vmatpush1.msra.mxu0 %v2308_v28  ;;  %1051 = vmatpush1.msra.mxu1 %v2311_v29 }
 0x3fb   :  { %981 = vmatprep.subr.mxu0 %v2314_v30  ;;  %1052 = vmatprep.subr.mxu1 %v2317_v31 }
 0x3fc   :  { %982 = vmatpush1.msra.mxu0 %v2320_v32  ;;  %1053 = vmatpush1.msra.mxu1 %v2323_v33 }
 0x3fd   :  { %983 = vmatprep.subr.mxu0 %v2326_v34  ;;  %1054 = vmatprep.subr.mxu1 %v2329_v35 }
 0x3fe   :  { %984 = vmatpush1.msra.mxu0 %v2332_v36  ;;  %1055 = vmatpush1.msra.mxu1 %v2335_v37 }
 0x3ff   :  { %985 = vmatprep.subr.mxu0 %v2338_v38  ;;  %1056 = vmatprep.subr.mxu1 %v2341_v39 }
 0x400   :  { %986 = vmatpush1.msra.mxu0 %v2344_v41  ;;  %1057 = vmatpush1.msra.mxu1 %v2347_v62 }
 0x401   :  { %987 = vmatprep.subr.mxu0 %v2350_v48  ;;  %1058 = vmatprep.subr.mxu1 %v2353_v1 }
 0x402   :  { %988 = vmatpush1.msra.mxu0 %v2356_v6  ;;  %1059 = vmatpush1.msra.mxu1 %v2359_v45 }
 0x403   :  { %989 = vmatprep.subr.mxu0 %v2362_v0  ;;  %1060 = vmatprep.subr.mxu1 %v2365_v57 }
 0x404   :  { %990 = vmatpush1.msra.mxu0 %v2368_v54  ;;  %1061 = vmatpush1.msra.mxu1 %v2371_v49 }
 0x405   :  { %991 = vmatprep.subr.mxu0 %v2374_v53  ;;  %1062 = vmatprep.subr.mxu1 %v1909_v40  ;;  %v2412_v40 = vld [vmem:[#allocation7 + $0x1e8] sm:$0xff] }
 0x406   :  { %992 = vmatpush1.msra.mxu0 %v2378_v60  ;;  %1063 = vmatpush1.msra.mxu1 %v1915_v42  ;;  %v2415_v42 = vld [vmem:[#allocation7 + $0x1f8] sm:$0xff] }
 0x407   :  { %993 = vmatprep.subr.mxu0 %v2382_v55  ;;  %1064 = vmatprep.subr.mxu1 %v1921_v44 }
 0x408   :  { %994 = vmatpush1.msra.mxu0 %v2386_v56  ;;  %1065 = vmatpush1.msra.mxu1 %v1927_v46  ;;  %v799_v46 = vld [vmem:[#allocation4 + $0x88] sm:$0xff] }
 0x409   :  { %995 = vmatprep.subr.mxu0 %v1918_v43  ;;  %1066 = vmatprep.subr.mxu1 %v2749_v2  ;;  %v798_v43 = vld [vmem:[#allocation4 + $0x80] sm:$0xff] }
 0x40a   :  { %996 = vmatpush1.msra.mxu0 %v2750_v3  ;;  %1067 = vmatpush1.msra.mxu1 %v2751_v4 }
 0x40b   :  { %997 = vmatprep.subr.mxu0 %v2752_v5  ;;  %1068 = vmatprep.subr.mxu1 %v2753_v7  ;;  %v800_v7 = vld [vmem:[#allocation4 + $0x90] sm:$0xff] }
 0x40c   :  { %998 = vmatpush1.msra.mxu0 %v2754_v8  ;;  %1069 = vmatpush1.msra.mxu1 %v2755_v9 }
 0x40d   :  { %999 = vmatprep.subr.mxu0 %v2756_v10  ;;  %1070 = vmatprep.subr.mxu1 %v2757_v11  ;;  %v801_v11 = vld [vmem:[#allocation4 + $0x98] sm:$0xff] }
 0x40e   :  { %1000 = vmatpush1.msra.mxu0 %v2758_v12  ;;  %1071 = vmatpush1.msra.mxu1 %v2759_v13 }
 0x40f   :  { %1001 = vmatprep.subr.mxu0 %v2760_v14  ;;  %1072 = vmatprep.subr.mxu1 %v2761_v15 }
 0x410   :  { %1002 = vmatpush1.msra.mxu0 %v2762_v16  ;;  %1073 = vmatpush1.msra.mxu1 %v2763_v17 }
 0x411   :  { %1003 = vmatprep.subr.mxu0 %v2764_v18  ;;  %1074 = vmatprep.subr.mxu1 %v2765_v19 }
 0x412   :  { %1004 = vmatpush1.msra.mxu0 %v2766_v20  ;;  %1037 = vmatprep.mubr.f32.mxu0 %v2767_v21 }
 0x413   :  { %1075 = vmatpush1.msra.mxu1 %v2768_v22  ;;  %1108 = vmatprep.mubr.f32.mxu1 %v2767_v21 }
 0x414   :  { %1144 = vmatprep.subr.mxu0 %v2412_v40  ;;  %1215 = vmatprep.subr.mxu1 %v2415_v42 }
 0x4b3   :  { %v868_v44 = vpop.f32.mrf.mxu0  ;;  %v939_v8 = vpop.f32.mrf.mxu1 }
 0x4b4   :  { %v944_v2 = vadd.f32 %v868_v44, %v798_v43  ;;  %v946_v10 = vadd.f32 %v939_v8, %v800_v7  ;;  %v2461_v8 = vld [vmem:[#allocation7 + $0xd0] sm:$0xff] }
 0x4b5   :  { %v870_v3 = vpop.f32.mrf.mxu0  ;;  %v941_v12 = vpop.f32.mrf.mxu1 }
 0x4b6   :  { %v948_v4 = vmul.f32 0.5, %v944_v2  ;;  %v945_v5 = vadd.f32 %v870_v3, %v799_v46  ;;  %v947_v13 = vadd.f32 %v941_v12, %v801_v11  ;;  %v2472_v11 = vld [vmem:[#allocation7 + $0x88] sm:$0xff]  ;;  %v2475_v12 = vld [vmem:[#allocation7 + $0x98] sm:$0xff] }
 0x4b7   :  { %2771 = vst [vmem:[#allocation20_spill] sm:$0xff] %v2475_v12 }
 0x4b8   :  { %1568 = vtanh.f32 %v948_v4  ;;  %v952_v9 = vmul.f32 0.5, %v945_v5  ;;  %v957_v14 = vmul.f32 0.5, %v947_v13  ;;  %v2478_v13 = vld [vmem:[#allocation7 + $0x80] sm:$0xff] }
 0x4b9   :  { %2772 = vst [vmem:[#allocation18_spill] sm:$0xff] %v2478_v13 }
 0x4ba   :  { %1570 = vtanh.f32 %v952_v9  ;;  %v2465_v9 = vld [vmem:[#allocation7 + $0xb8] sm:$0xff] }
 0x4bb   :  { %1572 = vtanh.f32 %v946_v10  ;;  %v2469_v10 = vld [vmem:[#allocation7 + $0xb0] sm:$0xff] }
 0x4bc   :  { %1574 = vtanh.f32 %v957_v14  ;;  %v2481_v14 = vld [vmem:[#allocation7 + $0x90] sm:$0xff] }
 0x4bd   :  { %2773 = vst [vmem:[#allocation22_spill] sm:$0xff] %v2481_v14 }
 0x4c5   :  { %v1569_v15 = vpop.eup %1568 }
 0x4c6   :  { %v950_v16 = vadd.f32 1.0, %v1569_v15  ;;  %v2484_v15 = vld [vmem:[#allocation7 + $0x68] sm:$0xff] }
 0x4c7   :  { %v1571_v17 = vpop.eup %1570  ;;  %2774 = vst [vmem:[#allocation19_spill] sm:$0xff] %v2484_v15 }
 0x4c8   :  { %v951_v18 = vmul.f32 0.5, %v950_v16  ;;  %v954_v19 = vadd.f32 1.0, %v1571_v17  ;;  %v1573_v22 = vpop.eup %1572  ;;  %v2487_v16 = vld [vmem:[#allocation7 + $0x78] sm:$0xff]  ;;  %v2490_v17 = vld [vmem:[#allocation7 + $0x60] sm:$0xff] }
 0x4c9   :  { %v1575_v2 = vpop.eup %1574  ;;  %2775 = vst [vmem:[#allocation24_spill] sm:$0xff] %v2487_v16  ;;  %2776 = vst [vmem:[#allocation21_spill] sm:$0xff] %v2490_v17 }
 0x4ca   :  { %v955_v20 = vmul.f32 0.5, %v954_v19  ;;  %v962_v44 = vmul.f32 %v1573_v22, %v951_v18  ;;  %v959_v3 = vadd.f32 1.0, %v1575_v2  ;;  %v2493_v18 = vld [vmem:[#allocation7 + $0x70] sm:$0xff]  ;;  %v2496_v19 = vld [vmem:[#allocation7 + $0x48] sm:$0xff]  ;;  %v2502_v22 = vld [vmem:[#allocation7 + $0x40] sm:$0xff] }
 0x4cb   :  { %2777 = vst [vmem:[#allocation26_spill] sm:$0xff] %v2493_v18  ;;  %2778 = vst [vmem:[#allocation23_spill] sm:$0xff] %v2496_v19  ;;  %v2511_v2 = vld [vmem:[#allocation7 + $0x38] sm:$0xff] }
 0x4cc   :  { %v961_v43 = vmul.f32 %v955_v20, %v2269_v50  ;;  %v960_v4 = vmul.f32 0.5, %v959_v3  ;;  %v2457_v50 = vld [vmem:[#allocation7 + $0xd8] sm:$0xff]  ;;  %2780 = vst [vmem:[#allocation25_spill] sm:$0xff] %v2502_v22  ;;  %2783 = vst [vmem:[#allocation32_spill] sm:$0xff] %v2511_v2  ;;  %v2514_v3 = vld [vmem:[#allocation7 + $0x20] sm:$0xff] }
 0x4cd   :  { %v2499_v20 = vld [vmem:[#allocation7 + $0x58] sm:$0xff]  ;;  %2784 = vst [vmem:[#allocation29_spill] sm:$0xff] %v2514_v3 }
 0x4ce   :  { %v2419_v46 = vadd.f32 %v962_v44, %v961_v43  ;;  %2779 = vst [vmem:[#allocation28_spill] sm:$0xff] %v2499_v20  ;;  %v2505_v43 = vld [vmem:[#allocation7 + $0x50] sm:$0xff]  ;;  %v2508_v44 = vld [vmem:[#allocation7 + $0x28] sm:$0xff] }
 0x4cf   :  { %2781 = vst [vmem:[#allocation30_spill] sm:$0xff] %v2505_v43  ;;  %2782 = vst [vmem:[#allocation27_spill] sm:$0xff] %v2508_v44 }
 0x4d0   :  { %1576 = vtanh.f32 %v2419_v46 }
 0x4dd   :  { %v1577_v5 = vpop.eup %1576 }
 0x4de   :  { %v965_v7 = vmul.f32 %v1577_v5, %v960_v4  ;;  %v2517_v4 = vld [vmem:[#allocation7 + $0x30] sm:$0xff]  ;;  %v2520_v5 = vld [vmem:[#allocation7 + $0x8] sm:$0xff] }
 0x4df   :  { %2785 = vst [vmem:[#allocation34_spill] sm:$0xff] %v2517_v4  ;;  %2786 = vst [vmem:[#allocation31_spill] sm:$0xff] %v2520_v5 }
 0x4e0   :  { %967 = vst [vmem:[#allocation9 + $0x20] sm:$0xff] %v965_v7  ;;  %1038 = vmatmul.mubr.f32.vlgmr.msra.gmra.mxu0 %v965_v7  ;;  %1109 = vmatmul.mubr.f32.vlgmr.msra.gmra.mxu1 %v965_v7  ;;  %v2523_v7 = vld [vmem:[#allocation7 + $0x18] sm:$0xff] }
 0x4e1   :  { %1145 = vmatpush1.msra.mxu0 %v2272_v58  ;;  %1216 = vmatpush1.msra.mxu1 %v2275_v63  ;;  %2787 = vst [vmem:[#allocation35_spill] sm:$0xff] %v2523_v7 }
 0x4e2   :  { %1146 = vmatprep.subr.mxu0 %v2278_v59  ;;  %1217 = vmatprep.subr.mxu1 %v2281_v51 }
 0x4e3   :  { %1147 = vmatpush1.msra.mxu0 %v2284_v61  ;;  %1218 = vmatpush1.msra.mxu1 %v2287_v47 }
 0x4e4   :  { %1148 = vmatprep.subr.mxu0 %v2290_v52  ;;  %1219 = vmatprep.subr.mxu1 %v2293_v23 }
 0x4e5   :  { %1149 = vmatpush1.msra.mxu0 %v2296_v24  ;;  %1220 = vmatpush1.msra.mxu1 %v2299_v25 }
 0x4e6   :  { %1150 = vmatprep.subr.mxu0 %v2302_v26  ;;  %1221 = vmatprep.subr.mxu1 %v2305_v27 }
 0x4e7   :  { %1151 = vmatpush1.msra.mxu0 %v2308_v28  ;;  %1222 = vmatpush1.msra.mxu1 %v2311_v29 }
 0x4e8   :  { %1152 = vmatprep.subr.mxu0 %v2314_v30  ;;  %1223 = vmatprep.subr.mxu1 %v2317_v31 }
 0x4e9   :  { %1153 = vmatpush1.msra.mxu0 %v2320_v32  ;;  %1224 = vmatpush1.msra.mxu1 %v2323_v33 }
 0x4ea   :  { %1154 = vmatprep.subr.mxu0 %v2326_v34  ;;  %1225 = vmatprep.subr.mxu1 %v2329_v35 }
 0x4eb   :  { %1155 = vmatpush1.msra.mxu0 %v2332_v36  ;;  %1226 = vmatpush1.msra.mxu1 %v2335_v37 }
 0x4ec   :  { %1156 = vmatprep.subr.mxu0 %v2338_v38  ;;  %1227 = vmatprep.subr.mxu1 %v2341_v39 }
 0x4ed   :  { %1157 = vmatpush1.msra.mxu0 %v2344_v41  ;;  %1228 = vmatpush1.msra.mxu1 %v2347_v62 }
 0x4ee   :  { %1158 = vmatprep.subr.mxu0 %v2350_v48  ;;  %1229 = vmatprep.subr.mxu1 %v2353_v1 }
 0x4ef   :  { %1159 = vmatpush1.msra.mxu0 %v2356_v6  ;;  %1230 = vmatpush1.msra.mxu1 %v2359_v45 }
 0x4f0   :  { %1160 = vmatprep.subr.mxu0 %v2362_v0  ;;  %1231 = vmatprep.subr.mxu1 %v2365_v57 }
 0x4f1   :  { %1161 = vmatpush1.msra.mxu0 %v2368_v54  ;;  %1232 = vmatpush1.msra.mxu1 %v2371_v49 }
 0x4f2   :  { %1162 = vmatprep.subr.mxu0 %v2374_v53  ;;  %1233 = vmatprep.subr.mxu1 %v2457_v50 }
 0x4f3   :  { %1163 = vmatpush1.msra.mxu0 %v2378_v60  ;;  %1234 = vmatpush1.msra.mxu1 %v2461_v8 }
 0x4f4   :  { %1164 = vmatprep.subr.mxu0 %v2382_v55  ;;  %1235 = vmatprep.subr.mxu1 %v2465_v9 }
 0x4f5   :  { %1165 = vmatpush1.msra.mxu0 %v2386_v56  ;;  %1236 = vmatpush1.msra.mxu1 %v2469_v10 }
 0x4f6   :  { %1166 = vmatprep.subr.mxu0 %v2472_v11  ;;  %1237 = vmatprep.subr.mxu1 %v2475_v12 }
 0x4f7   :  { %1167 = vmatpush1.msra.mxu0 %v2478_v13  ;;  %1238 = vmatpush1.msra.mxu1 %v2481_v14 }
 0x4f8   :  { %1168 = vmatprep.subr.mxu0 %v2484_v15  ;;  %1239 = vmatprep.subr.mxu1 %v2487_v16 }
 0x4f9   :  { %1169 = vmatpush1.msra.mxu0 %v2490_v17  ;;  %1240 = vmatpush1.msra.mxu1 %v2493_v18 }
 0x4fa   :  { %1170 = vmatprep.subr.mxu0 %v2496_v19  ;;  %1241 = vmatprep.subr.mxu1 %v2499_v20 }
 0x4fb   :  { %1171 = vmatpush1.msra.mxu0 %v2502_v22  ;;  %1242 = vmatpush1.msra.mxu1 %v2505_v43 }
 0x4fc   :  { %1172 = vmatprep.subr.mxu0 %v2508_v44  ;;  %1243 = vmatprep.subr.mxu1 %v2511_v2  ;;  %v2526_v44 = vld [vmem:[#allocation7] sm:$0xff]  ;;  %v2530_v2 = vld [vmem:[#allocation7 + $0x10] sm:$0xff] }
 0x4fd   :  { %1173 = vmatpush1.msra.mxu0 %v2514_v3  ;;  %1244 = vmatpush1.msra.mxu1 %v2517_v4  ;;  %2788 = vst [vmem:[#allocation33_spill] sm:$0xff] %v2526_v44  ;;  %2789 = vst [vmem:[#allocation36_spill] sm:$0xff] %v2530_v2  ;;  %v970_v3 = vld [vmem:[#allocation4 + $0xa8] sm:$0xff] }
 0x4fe   :  { %1174 = vmatprep.subr.mxu0 %v2520_v5  ;;  %1245 = vmatprep.subr.mxu1 %v2523_v7  ;;  %v969_v5 = vld [vmem:[#allocation4 + $0xa0] sm:$0xff] }
 0x4ff   :  { %1175 = vmatpush1.msra.mxu0 %v2526_v44  ;;  %1208 = vmatprep.mubr.f32.mxu0 %v2767_v21  ;;  %v971_v44 = vld [vmem:[#allocation4 + $0xb0] sm:$0xff] }
 0x500   :  { %1246 = vmatpush1.msra.mxu1 %v2530_v2  ;;  %1279 = vmatprep.mubr.f32.mxu1 %v2767_v21  ;;  %v972_v2 = vld [vmem:[#allocation4 + $0xb8] sm:$0xff] }
 0x501   :  { %1315 = vmatprep.subr.mxu0 %v2412_v40  ;;  %1386 = vmatprep.subr.mxu1 %v2415_v42 }
 0x5a0   :  { %v1039_v4 = vpop.f32.mrf.mxu0  ;;  %v1110_v19 = vpop.f32.mrf.mxu1 }
 0x5a1   :  { %v1115_v7 = vadd.f32 %v1039_v4, %v969_v5  ;;  %v1117_v17 = vadd.f32 %v1110_v19, %v971_v44 }
 0x5a2   :  { %v1041_v43 = vpop.f32.mrf.mxu0  ;;  %v1112_v16 = vpop.f32.mrf.mxu1 }
 0x5a3   :  { %v1119_v22 = vmul.f32 0.5, %v1115_v7  ;;  %v1116_v20 = vadd.f32 %v1041_v43, %v970_v3  ;;  %v1118_v21 = vadd.f32 %v1112_v16, %v972_v2  ;;  %v1311_v2 = vld [vmem:[#allocation4 + $0xe0] sm:$0xff] }
 0x5a5   :  { %1578 = vtanh.f32 %v1119_v22  ;;  %v1123_v18 = vmul.f32 0.5, %v1116_v20  ;;  %v1128_v40 = vmul.f32 0.5, %v1118_v21 }
 0x5a7   :  { %1580 = vtanh.f32 %v1123_v18 }
 0x5a8   :  { %1582 = vtanh.f32 %v1117_v17 }
 0x5a9   :  { %1584 = vtanh.f32 %v1128_v40  ;;  %v1312_v40 = vld [vmem:[#allocation4 + $0xe8] sm:$0xff] }
 0x5b2   :  { %v1579_v15 = vpop.eup %1578 }
 0x5b3   :  { %v1121_v42 = vadd.f32 1.0, %v1579_v15 }
 0x5b4   :  { %v1581_v14 = vpop.eup %1580 }
 0x5b5   :  { %v1122_v13 = vmul.f32 0.5, %v1121_v42  ;;  %v1125_v12 = vadd.f32 1.0, %v1581_v14  ;;  %v1583_v5 = vpop.eup %1582 }
 0x5b6   :  { %v1585_v18 = vpop.eup %1584 }
 0x5b7   :  { %v1126_v4 = vmul.f32 0.5, %v1125_v12  ;;  %v1133_v3 = vmul.f32 %v1583_v5, %v1122_v13  ;;  %v1130_v19 = vadd.f32 1.0, %v1585_v18 }
 0x5b9   :  { %v1132_v43 = vmul.f32 %v1126_v4, %v2419_v46  ;;  %v1131_v17 = vmul.f32 0.5, %v1130_v19 }
 0x5bb   :  { %v2537_v22 = vadd.f32 %v1133_v3, %v1132_v43  ;;  %v1313_v3 = vld [vmem:[#allocation4 + $0xf0] sm:$0xff] }
 0x5bd   :  { %1586 = vtanh.f32 %v2537_v22 }
 0x5ca   :  { %v1587_v16 = vpop.eup %1586 }
 0x5cb   :  { %v1136_v21 = vmul.f32 %v1587_v16, %v1131_v17  ;;  %v1314_v17 = vld [vmem:[#allocation4 + $0xf8] sm:$0xff] }
 0x5cd   :  { %1138 = vst [vmem:[#allocation9 + $0x28] sm:$0xff] %v1136_v21  ;;  %1209 = vmatmul.mubr.f32.vlgmr.msra.gmra.mxu0 %v1136_v21  ;;  %1280 = vmatmul.mubr.f32.vlgmr.msra.gmra.mxu1 %v1136_v21 }
 0x5ce   :  { %1316 = vmatpush1.msra.mxu0 %v2272_v58  ;;  %1387 = vmatpush1.msra.mxu1 %v2275_v63  ;;  %v2790_v58 = vld [vmem:[#allocation20_spill] sm:$0xff]  ;;  %v2791_v63 = vld [vmem:[#allocation18_spill] sm:$0xff] }
 0x5cf   :  { %1317 = vmatprep.subr.mxu0 %v2278_v59  ;;  %1388 = vmatprep.subr.mxu1 %v2281_v51  ;;  %v2792_v59 = vld [vmem:[#allocation22_spill] sm:$0xff]  ;;  %v2793_v51 = vld [vmem:[#allocation19_spill] sm:$0xff] }
 0x5d0   :  { %1318 = vmatpush1.msra.mxu0 %v2284_v61  ;;  %1389 = vmatpush1.msra.mxu1 %v2287_v47  ;;  %v2794_v61 = vld [vmem:[#allocation24_spill] sm:$0xff]  ;;  %v2795_v47 = vld [vmem:[#allocation21_spill] sm:$0xff] }
 0x5d1   :  { %1319 = vmatprep.subr.mxu0 %v2290_v52  ;;  %1390 = vmatprep.subr.mxu1 %v2293_v23  ;;  %v2796_v52 = vld [vmem:[#allocation26_spill] sm:$0xff]  ;;  %v2797_v23 = vld [vmem:[#allocation23_spill] sm:$0xff] }
 0x5d2   :  { %1320 = vmatpush1.msra.mxu0 %v2296_v24  ;;  %1391 = vmatpush1.msra.mxu1 %v2299_v25  ;;  %v2798_v24 = vld [vmem:[#allocation28_spill] sm:$0xff]  ;;  %v2799_v25 = vld [vmem:[#allocation25_spill] sm:$0xff] }
 0x5d3   :  { %1321 = vmatprep.subr.mxu0 %v2302_v26  ;;  %1392 = vmatprep.subr.mxu1 %v2305_v27  ;;  %v2800_v26 = vld [vmem:[#allocation30_spill] sm:$0xff]  ;;  %v2801_v27 = vld [vmem:[#allocation27_spill] sm:$0xff] }
 0x5d4   :  { %1322 = vmatpush1.msra.mxu0 %v2308_v28  ;;  %1393 = vmatpush1.msra.mxu1 %v2311_v29  ;;  %v2802_v28 = vld [vmem:[#allocation32_spill] sm:$0xff]  ;;  %v2803_v29 = vld [vmem:[#allocation29_spill] sm:$0xff] }
 0x5d5   :  { %1323 = vmatprep.subr.mxu0 %v2314_v30  ;;  %1394 = vmatprep.subr.mxu1 %v2317_v31  ;;  %v2804_v30 = vld [vmem:[#allocation34_spill] sm:$0xff]  ;;  %v2805_v31 = vld [vmem:[#allocation31_spill] sm:$0xff] }
 0x5d6   :  { %1324 = vmatpush1.msra.mxu0 %v2320_v32  ;;  %1395 = vmatpush1.msra.mxu1 %v2323_v33  ;;  %v2806_v32 = vld [vmem:[#allocation35_spill] sm:$0xff]  ;;  %v2807_v33 = vld [vmem:[#allocation33_spill] sm:$0xff] }
 0x5d7   :  { %1325 = vmatprep.subr.mxu0 %v2326_v34  ;;  %1396 = vmatprep.subr.mxu1 %v2329_v35  ;;  %v2808_v34 = vmov 0.0   ;;  %v2809_v35 = vld [vmem:[#allocation36_spill] sm:$0xff] }
 0x5d8   :  { %1326 = vmatpush1.msra.mxu0 %v2332_v36  ;;  %1397 = vmatpush1.msra.mxu1 %v2335_v37  ;;  %v1140_v36 = vld [vmem:[#allocation4 + $0xc0] sm:$0xff] }
 0x5d9   :  { %1327 = vmatprep.subr.mxu0 %v2338_v38  ;;  %1398 = vmatprep.subr.mxu1 %v2341_v39  ;;  %v1141_v38 = vld [vmem:[#allocation4 + $0xc8] sm:$0xff] }
 0x5da   :  { %1328 = vmatpush1.msra.mxu0 %v2344_v41  ;;  %1399 = vmatpush1.msra.mxu1 %v2347_v62 }
 0x5db   :  { %1329 = vmatprep.subr.mxu0 %v2350_v48  ;;  %1400 = vmatprep.subr.mxu1 %v2353_v1  ;;  %v1142_v1 = vld [vmem:[#allocation4 + $0xd0] sm:$0xff] }
 0x5dc   :  { %1330 = vmatpush1.msra.mxu0 %v2356_v6  ;;  %1401 = vmatpush1.msra.mxu1 %v2359_v45 }
 0x5dd   :  { %1331 = vmatprep.subr.mxu0 %v2362_v0  ;;  %1402 = vmatprep.subr.mxu1 %v2365_v57  ;;  %v1143_v57 = vld [vmem:[#allocation4 + $0xd8] sm:$0xff] }
 0x5de   :  { %1332 = vmatpush1.msra.mxu0 %v2368_v54  ;;  %1403 = vmatpush1.msra.mxu1 %v2371_v49 }
 0x5df   :  { %1333 = vmatprep.subr.mxu0 %v2374_v53  ;;  %1404 = vmatprep.subr.mxu1 %v2457_v50 }
 0x5e0   :  { %1334 = vmatpush1.msra.mxu0 %v2378_v60  ;;  %1405 = vmatpush1.msra.mxu1 %v2461_v8 }
 0x5e1   :  { %1335 = vmatprep.subr.mxu0 %v2382_v55  ;;  %1406 = vmatprep.subr.mxu1 %v2465_v9 }
 0x5e2   :  { %1336 = vmatpush1.msra.mxu0 %v2386_v56  ;;  %1407 = vmatpush1.msra.mxu1 %v2469_v10 }
 0x5e3   :  { %1337 = vmatprep.subr.mxu0 %v2472_v11  ;;  %1408 = vmatprep.subr.mxu1 %v2790_v58 }
 0x5e4   :  { %1338 = vmatpush1.msra.mxu0 %v2791_v63  ;;  %1409 = vmatpush1.msra.mxu1 %v2792_v59 }
 0x5e5   :  { %1339 = vmatprep.subr.mxu0 %v2793_v51  ;;  %1410 = vmatprep.subr.mxu1 %v2794_v61 }
 0x5e6   :  { %1340 = vmatpush1.msra.mxu0 %v2795_v47  ;;  %1411 = vmatpush1.msra.mxu1 %v2796_v52 }
 0x5e7   :  { %1341 = vmatprep.subr.mxu0 %v2797_v23  ;;  %1412 = vmatprep.subr.mxu1 %v2798_v24 }
 0x5e8   :  { %1342 = vmatpush1.msra.mxu0 %v2799_v25  ;;  %1413 = vmatpush1.msra.mxu1 %v2800_v26 }
 0x5e9   :  { %1343 = vmatprep.subr.mxu0 %v2801_v27  ;;  %1414 = vmatprep.subr.mxu1 %v2802_v28 }
 0x5ea   :  { %1344 = vmatpush1.msra.mxu0 %v2803_v29  ;;  %1415 = vmatpush1.msra.mxu1 %v2804_v30 }
 0x5eb   :  { %1345 = vmatprep.subr.mxu0 %v2805_v31  ;;  %1416 = vmatprep.subr.mxu1 %v2806_v32 }
 0x5ec   :  { %1346 = vmatpush1.msra.mxu0 %v2807_v33  ;;  %1379 = vmatprep.mubr.f32.mxu0 %v2808_v34 }
 0x5ed   :  { %1417 = vmatpush1.msra.mxu1 %v2809_v35  ;;  %1450 = vmatprep.mubr.f32.mxu1 %v2808_v34 }
 0x68d   :  { %v1210_v37 = vpop.f32.mrf.mxu0  ;;  %v1281_v6 = vpop.f32.mrf.mxu1 }
 0x68e   :  { %v1286_v39 = vadd.f32 %v1210_v37, %v1140_v36  ;;  %v1288_v0 = vadd.f32 %v1281_v6, %v1142_v1 }
 0x68f   :  { %v1212_v41 = vpop.f32.mrf.mxu0  ;;  %v1283_v54 = vpop.f32.mrf.mxu1 }
 0x690   :  { %v1290_v62 = vmul.f32 0.5, %v1286_v39  ;;  %v1287_v48 = vadd.f32 %v1212_v41, %v1141_v38  ;;  %v1289_v49 = vadd.f32 %v1283_v54, %v1143_v57 }
 0x692   :  { %1588 = vtanh.f32 %v1290_v62  ;;  %v1294_v45 = vmul.f32 0.5, %v1287_v48  ;;  %v1299_v53 = vmul.f32 0.5, %v1289_v49 }
 0x694   :  { %1590 = vtanh.f32 %v1294_v45 }
 0x695   :  { %1592 = vtanh.f32 %v1288_v0 }
 0x696   :  { %1594 = vtanh.f32 %v1299_v53 }
 0x69f   :  { %v1589_v60 = vpop.eup %1588 }
 0x6a0   :  { %v1292_v55 = vadd.f32 1.0, %v1589_v60 }
 0x6a1   :  { %v1591_v56 = vpop.eup %1590 }
 0x6a2   :  { %v1293_v46 = vmul.f32 0.5, %v1292_v55  ;;  %v1296_v50 = vadd.f32 1.0, %v1591_v56  ;;  %v1593_v9 = vpop.eup %1592 }
 0x6a3   :  { %v1595_v13 = vpop.eup %1594 }
 0x6a4   :  { %v1297_v8 = vmul.f32 0.5, %v1296_v50  ;;  %v1304_v11 = vmul.f32 %v1593_v9, %v1293_v46  ;;  %v1301_v14 = vadd.f32 1.0, %v1595_v13 }
 0x6a6   :  { %v1303_v10 = vmul.f32 %v1297_v8, %v2537_v22  ;;  %v1302_v15 = vmul.f32 0.5, %v1301_v14 }
 0x6a8   :  { %v1305_v12 = vadd.f32 %v1304_v11, %v1303_v10 }
 0x6aa   :  { %1596 = vtanh.f32 %v1305_v12 }
 0x6b7   :  { %v1597_v20 = vpop.eup %1596 }
 0x6b8   :  { %v1307_v44 = vmul.f32 %v1597_v20, %v1302_v15 }
 0x6ba   :  { %1309 = vst [vmem:[#allocation9 + $0x30] sm:$0xff] %v1307_v44  ;;  %1380 = vmatmul.mubr.f32.vlgmr.msra.gmra.mxu0 %v1307_v44  ;;  %1451 = vmatmul.mubr.f32.vlgmr.msra.gmra.mxu1 %v1307_v44 }
 0x77a   :  { %v1381_v7 = vpop.f32.mrf.mxu0  ;;  %v1452_v22 = vpop.f32.mrf.mxu1 }
 0x77b   :  { %v1457_v42 = vadd.f32 %v1381_v7, %v1311_v2  ;;  %v1459_v19 = vadd.f32 %v1452_v22, %v1313_v3 }
 0x77c   :  { %v1383_v4 = vpop.f32.mrf.mxu0  ;;  %v1454_v16 = vpop.f32.mrf.mxu1 }
 0x77d   :  { %v1461_v5 = vmul.f32 0.5, %v1457_v42  ;;  %v1458_v43 = vadd.f32 %v1383_v4, %v1312_v40  ;;  %v1460_v21 = vadd.f32 %v1454_v16, %v1314_v17 }
 0x77f   :  { %1598 = vtanh.f32 %v1461_v5  ;;  %v1465_v18 = vmul.f32 0.5, %v1458_v43  ;;  %v1470_v58 = vmul.f32 0.5, %v1460_v21 }
 0x781   :  { %1600 = vtanh.f32 %v1465_v18 }
 0x782   :  { %1602 = vtanh.f32 %v1459_v19 }
 0x783   :  { %1604 = vtanh.f32 %v1470_v58 }
 0x78c   :  { %v1599_v63 = vpop.eup %1598 }
 0x78d   :  { %v1463_v59 = vadd.f32 1.0, %v1599_v63 }
 0x78e   :  { %v1601_v51 = vpop.eup %1600 }
 0x78f   :  { %v1464_v61 = vmul.f32 0.5, %v1463_v59  ;;  %v1467_v47 = vadd.f32 1.0, %v1601_v51  ;;  %v1603_v23 = vpop.eup %1602 }
 0x791   :  { %v1468_v52 = vmul.f32 0.5, %v1467_v47  ;;  %v1475_v25 = vmul.f32 %v1603_v23, %v1464_v61 }
 0x793   :  { %v1474_v24 = vmul.f32 %v1468_v52, %v1305_v12 }
 0x795   :  { %v1476_v26 = vadd.f32 %v1475_v25, %v1474_v24 }
 0x797   :  { %1606 = vtanh.f32 %v1476_v26  ;;  %1486 = vst [vmem:[#allocation10] sm:$0xff] %v1476_v26 }
 0x798   :  { %1723 = shalt.err (!%p1720_p0)
}
 0x799   :  { %1508 = dma.vmem_to_hbm [thread:$0]  %s1506_s1, 128, %s2614_s3, [#allocation11]   ;;  %v1605_v27 = vpop.eup %1604 }
 0x79a   :  { %v1472_v28 = vadd.f32 1.0, %v1605_v27  ;;  %s1766_s27 = smov [#allocation9]  }
 0x79b   :  { %s1492_s28 = sshll.u32 %s1766_s27, 4  ;;  %s1493_s28 = int_to_ptr.vmem [resolvable:$true] %s1492_s28 }
 0x79c   :  { %v1473_v29 = vmul.f32 0.5, %v1472_v28  ;;  %s1732_s29 = scalar_lea.vmem %s1493_s28, 1024  ;;  %p1737_p2 = scmp.lt.s32.totalorder %s1493_s28, %s1493_s28 }
 0x79d   :  { %p1733_p1 = scmp.ne.s32.totalorder %s1493_s28, %s1732_s29  ;;  %p1738_p3 = scmp.lt.s32.totalorder %s1732_s29, %s1732_s29 }
 0x79f   :  { %p1739_p4 = por %p1738_p3, %p1737_p2 }
 0x7a1   :  { %p1740_p5 = pnand %p1739_p4, %p1733_p1 }
 0x7a4   :  { %v1607_v30 = vpop.eup %1606 }
 0x7a5   :  { %v1478_v31 = vmul.f32 %v1607_v30, %v1473_v29 }
 0x7a7   :  { %1480 = vst [vmem:[#allocation9 + $0x38] sm:$0xff] %v1478_v31 }
 0x7a8   :  { %1743 = shalt.err (!%p1740_p5)
}
 0x7a9   :  { %s1767_s30 = smov 128   ;;  %s1768_s4 = smov 8  }
 0x7aa   :  { %1498 = dma.vmem_to_hbm [thread:$0]  %s1493_s28, 1024, %s2613_s2, [#allocation6], %s1767_s30, %s1767_s30, %s1768_s4  }
 0x7ab   :  { %1756 = dma.done.wait [#allocation6], 1024  }
 0x7ac   :  { %1757 = vsyncadd [#allocation6], 4294966272 }
 0x7ad   :  { %1758 = dma.done.wait [#allocation11], 128  }
 0x7ae   :  { %1759 = vsyncadd [#allocation11], 4294967168 }
 0x7af   :  { %1515 = vsyncpa [#allocation5], 1 }
 0x7b0   :  { %1516 = vsyncpa [#allocation8], 1 }
 0x7b1   :  { %1517 = vsyncpa [#allocation6], 1 }
 0x7b2   :  { %1518 = vsyncpa [#allocation11], 1 }

</bundles_post_ra>
